<compile_context>
chip_gen: v6e
topology: v6e:2x2x1
jax: 0.10.0
libtpu: 0.0.40
codegen_flags: <defaults>
</compile_context>

<pallas_src>
import functools

import jax
import jax.numpy as jnp
from jax.experimental import pallas as pl
from jax.experimental.pallas import tpu as pltpu  # noqa: F401  (TPU backend)

EPS = 1e-12  # F.normalize eps


def _full_spec(shape):
    # Single full-array block (no grid), resident in VMEM.
    return pl.BlockSpec(shape, lambda: (0,) * len(shape))


# ----------------------------- Pallas kernels ------------------------------

def _make_layer_kernel(normalize: bool):
    """Fused EGSAGE layer (edge_mode=1, relu, mean aggr) + edge-update MLP."""

    def kernel(x_ref, ea_ref, srcg_ref, dstg_ref, dsts_ref, invd_ref,
               wmx_ref, wme_ref, bm_ref,
               waa_ref, wax_ref, ba_ref,
               wei_ref, wej_ref, wea_ref, be_ref,
               xo_ref, eo_ref):
        bf16 = jnp.bfloat16
        f32 = jnp.float32

        x = x_ref[...]                      # [N, Fin]  f32
        x_b = x.astype(bf16)
        ea_b = ea_ref[...].astype(bf16)     # [E, Fe]   bf16 (for MXU)
        src_g = srcg_ref[...]               # [E, N] bf16 one-hot: gather x[src]
        dst_g = dstg_ref[...]               # [E, N] bf16 one-hot: gather x[dst]
        dst_s = dsts_ref[...]               # [N, E] bf16 one-hot: scatter->dst

        # --- message: m = relu( x[src] @ Wmx + edge_attr @ Wme + b_msg ) ---
        # node-side matmul once per node, then gather rows via one-hot matmul
        xw = jnp.dot(x_b, wmx_ref[...].astype(bf16),
                     preferred_element_type=f32)                    # [N, H]
        m = jnp.dot(src_g, xw.astype(bf16), preferred_element_type=f32)  # [E, H]
        m = m + jnp.dot(ea_b, wme_ref[...].astype(bf16),
                        preferred_element_type=f32)
        m = jnp.maximum(m + bm_ref[...], 0.0)

        # --- aggregate: mean of messages per target node (0 if no in-edge) ---
        aggr = jnp.dot(dst_s, m.astype(bf16),
                       preferred_element_type=f32) * invd_ref[...]  # [N, H]

        # --- update: x' = relu( aggr @ Waa + x @ Wax + b_agg ), opt. L2-norm ---
        upd = jnp.dot(aggr.astype(bf16), waa_ref[...].astype(bf16),
                      preferred_element_type=f32)
        upd = upd + jnp.dot(x_b, wax_ref[...].astype(bf16),
                            preferred_element_type=f32)
        upd = jnp.maximum(upd + ba_ref[...], 0.0)
        if normalize:  # F.normalize(p=2, dim=-1, eps=1e-12)
            sq = jnp.sum(upd * upd, axis=-1, keepdims=True)
            upd = upd * jax.lax.rsqrt(jnp.maximum(sq, EPS * EPS))
        xo_ref[...] = upd.astype(xo_ref.dtype)

        # --- edge update: e' = relu( x'[src]@Wei + x'[dst]@Wej + ea@Wea + b ) ---
        upd_b = upd.astype(bf16)
        xiw = jnp.dot(upd_b, wei_ref[...].astype(bf16),
                      preferred_element_type=f32)                   # [N, He]
        xjw = jnp.dot(upd_b, wej_ref[...].astype(bf16),
                      preferred_element_type=f32)                   # [N, He]
        e_new = jnp.dot(src_g, xiw.astype(bf16), preferred_element_type=f32)
        e_new = e_new + jnp.dot(dst_g, xjw.astype(bf16),
                                preferred_element_type=f32)
        e_new = e_new + jnp.dot(ea_b, wea_ref[...].astype(bf16),
                                preferred_element_type=f32)
        eo_ref[...] = jnp.maximum(e_new + be_ref[...], 0.0).astype(eo_ref.dtype)

    return kernel


def _post_mlp_kernel(x_ref, w0_ref, b0_ref, w1_ref, b1_ref, o_ref):
    """node_post_mlp: Linear -> relu -> (Dropout=identity) -> Linear, fused."""
    bf16 = jnp.bfloat16
    f32 = jnp.float32
    h = jnp.dot(x_ref[...].astype(bf16), w0_ref[...].astype(bf16),
                preferred_element_type=f32) + b0_ref[...]
    h = jnp.maximum(h, 0.0)
    # TODO(synk): nn.Dropout is identity at eval / dropout=0.0 — omitted.
    y = jnp.dot(h.astype(bf16), w1_ref[...].astype(bf16),
                preferred_element_type=f32) + b1_ref[...]
    o_ref[...] = y.astype(o_ref.dtype)


# --------------------------- fused layer wrappers ---------------------------

def egsage_fused_layer(x, edge_attr, src_g, dst_g, dst_s, inv_deg, p, norm_emb):
    N = x.shape[0]
    E = edge_attr.shape[0]
    H = p["w_msg_x"].shape[1]
    He = p["w_edge_a"].shape[1]
    operands = (x, edge_attr, src_g, dst_g, dst_s, inv_deg,
                p["w_msg_x"], p["w_msg_e"], p["b_msg"],
                p["w_agg_a"], p["w_agg_x"], p["b_agg"],
                p["w_edge_i"], p["w_edge_j"], p["w_edge_a"], p["b_edge"])
    return pl.pallas_call(
        _make_layer_kernel(norm_emb),
        out_shape=(jax.ShapeDtypeStruct((N, H), jnp.float32),
                   jax.ShapeDtypeStruct((E, He), jnp.float32)),
        in_specs=[_full_spec(a.shape) for a in operands],
        out_specs=(_full_spec((N, H)), _full_spec((E, He))),
    )(*operands)


def node_post_mlp(x, p):
    N = x.shape[0]
    Ho = p["w1"].shape[1]
    return pl.pallas_call(
        _post_mlp_kernel,
        out_shape=jax.ShapeDtypeStruct((N, Ho), jnp.float32),
        in_specs=[_full_spec(x.shape), _full_spec(p["w0"].shape),
                  _full_spec(p["b0"].shape), _full_spec(p["w1"].shape),
                  _full_spec(p["b1"].shape)],
        out_specs=_full_spec((N, Ho)),
    )(x, p["w0"], p["b0"], p["w1"], p["b1"])


# --------------------------- model (forward pass) ---------------------------

def egsage_stack_forward(params, x, edge_attr, edge_index, norm_embs):
    src = edge_index[0]                                   # source node j
    dst = edge_index[1]                                   # target node i
    N = x.shape[0]
    ar = jnp.arange(N)

    # Graph structure is constant across layers: build once (glue in JAX).
    src_g = (src[:, None] == ar[None, :]).astype(jnp.bfloat16)   # [E,N] gather x[src]
    dst_g = (dst[:, None] == ar[None, :]).astype(jnp.bfloat16)   # [E,N] gather x[dst]
    dst_eq = (dst[None, :] == ar[:, None])
    dst_s = dst_eq.astype(jnp.bfloat16)                          # [N,E] scatter-sum
    deg = jnp.sum(dst_eq.astype(jnp.float32), axis=1, keepdims=True)
    inv_deg = 1.0 / jnp.maximum(deg, 1.0)                        # [N,1]

    for l, p in enumerate(params["convs"]):
        x, edge_attr = egsage_fused_layer(x, edge_attr, src_g, dst_g, dst_s,
                                          inv_deg, p, norm_embs[l])

    return node_post_mlp(x, params["post"])


# ------------------------------ param init ----------------------------------

def _init_linear(key, fan_in, fan_out):
    kw, kb = jax.random.split(key)
    lim = (6.0 / (fan_in + fan_out)) ** 0.5
    w = jax.random.uniform(kw, (fan_in, fan_out), jnp.float32, -lim, lim)
    b = jax.random.uniform(kb, (fan_out,), jnp.float32, -lim, lim)
    return w, b


def init_params(key, init_node, init_edge, hidden_node, hidden_edge, layers):
    convs = []
    in_node, in_edge = init_node, init_edge
    for _ in range(layers):
        key, k1, k2, k3 = jax.random.split(key, 4)
        # message_lin: Linear(in_node + in_edge, hidden_node), input cat([x_j, edge_attr])
        w_msg, b_msg = _init_linear(k1, in_node + in_edge, hidden_node)
        # agg_lin: Linear(in_node + hidden_node, hidden_node), input cat([aggr, x])
        w_agg, b_agg = _init_linear(k2, hidden_node + in_node, hidden_node)
        # edge MLP: Linear(2*hidden_node + in_edge, hidden_edge), input cat([x_i, x_j, ea])
        w_e, b_e = _init_linear(k3, 2 * hidden_node + in_edge, hidden_edge)
        convs.append({
            "w_msg_x": w_msg[:in_node], "w_msg_e": w_msg[in_node:],
            "b_msg": b_msg.reshape(1, hidden_node),
            "w_agg_a": w_agg[:hidden_node], "w_agg_x": w_agg[hidden_node:],
            "b_agg": b_agg.reshape(1, hidden_node),
            "w_edge_i": w_e[:hidden_node],
            "w_edge_j": w_e[hidden_node:2 * hidden_node],
            "w_edge_a": w_e[2 * hidden_node:],
            "b_edge": b_e.reshape(1, hidden_edge),
        })
        in_node, in_edge = hidden_node, hidden_edge
    key, k1, k2 = jax.random.split(key, 3)
    w0, b0 = _init_linear(k1, hidden_node, hidden_node)
    w1, b1 = _init_linear(k2, hidden_node, hidden_node)
    post = {"w0": w0, "b0": b0.reshape(1, hidden_node),
            "w1": w1, "b1": b1.reshape(1, hidden_node)}
    return {"convs": convs, "post": post}


# --------------------------------- main --------------------------------------

if __name__ == "__main__":
    # config: type="EGSAGE_EGSAGE" (2 layers), edge_mode=1, activation=relu,
    # aggregation=mean, norm_embs=[True, True], concat_states=False,
    # dropout=0.0, node_post_mlp=[hidden_node]
    N_NODES, N_EDGES = 32, 64
    INIT_NODE, INIT_EDGE = 8, 4
    HIDDEN_NODE, HIDDEN_EDGE = 32, 16
    LAYERS = 2
    NORM_EMBS = [True, True]

    key = jax.random.PRNGKey(0)
    key, kx, ke, ki, kp = jax.random.split(key, 5)
    x = jax.random.normal(kx, (N_NODES, INIT_NODE), jnp.float32)
    edge_attr = jax.random.normal(ke, (N_EDGES, INIT_EDGE), jnp.float32)
    edge_index = jax.random.randint(ki, (2, N_EDGES), 0, N_NODES, jnp.int32)

    params = init_params(kp, INIT_NODE, INIT_EDGE, HIDDEN_NODE, HIDDEN_EDGE,
                         LAYERS)

    fwd = jax.jit(functools.partial(egsage_stack_forward,
                                    norm_embs=NORM_EMBS))
    out = fwd(params, x, edge_attr, edge_index)
    jax.block_until_ready(out)
    assert out.shape == (N_NODES, HIDDEN_NODE)
    assert jnp.all(jnp.isfinite(out))
    print("KERNEL_OK")
</pallas_src>

<mosaic_0001>
module attributes {stable_mosaic.version = 11 : i64} {
  func.func @_post_mlp_kernel(%arg0: memref<32x32xf32, #tpu.memory_space<vmem>>, %arg1: memref<32x32xf32, #tpu.memory_space<vmem>>, %arg2: memref<1x32xf32, #tpu.memory_space<vmem>>, %arg3: memref<32x32xf32, #tpu.memory_space<vmem>>, %arg4: memref<1x32xf32, #tpu.memory_space<vmem>>, %arg5: memref<32x32xf32, #tpu.memory_space<vmem>>) attributes {dimension_semantics = [], scalar_prefetch = 0 : i64, scratch_operands = 0 : i64, tpu.core_type = #tpu.core_type<tc>} {
    %c0 = arith.constant 0 : index
    %c0_0 = arith.constant 0 : index
    %0 = vector.load %arg0[%c0, %c0_0] : memref<32x32xf32, #tpu.memory_space<vmem>>, vector<32x32xf32>
    %1 = arith.truncf %0 : vector<32x32xf32> to vector<32x32xbf16>
    %c0_1 = arith.constant 0 : index
    %c0_2 = arith.constant 0 : index
    %2 = vector.load %arg1[%c0_1, %c0_2] : memref<32x32xf32, #tpu.memory_space<vmem>>, vector<32x32xf32>
    %3 = arith.truncf %2 : vector<32x32xf32> to vector<32x32xbf16>
    %cst = arith.constant dense<0.000000e+00> : vector<32x32xf32>
    %4 = tpu.matmul %1, %3, %cst {dimension_numbers = #tpu.dot_dimension_numbers<[1], [0], [0], [1], [0, 0, 1, 1], [], []>} : vector<32x32xbf16>, vector<32x32xbf16>, vector<32x32xf32> -> vector<32x32xf32>
    %c0_3 = arith.constant 0 : index
    %c0_4 = arith.constant 0 : index
    %5 = vector.load %arg2[%c0_3, %c0_4] : memref<1x32xf32, #tpu.memory_space<vmem>>, vector<1x32xf32>
    %6 = vector.broadcast %5 : vector<1x32xf32> to vector<32x32xf32>
    %7 = arith.addf %4, %6 : vector<32x32xf32>
    %cst_5 = arith.constant 0.000000e+00 : f32
    %8 = vector.broadcast %cst_5 : f32 to vector<32x32xf32>
    %9 = arith.maximumf %7, %8 : vector<32x32xf32>
    %10 = arith.truncf %9 : vector<32x32xf32> to vector<32x32xbf16>
    %c0_6 = arith.constant 0 : index
    %c0_7 = arith.constant 0 : index
    %11 = vector.load %arg3[%c0_6, %c0_7] : memref<32x32xf32, #tpu.memory_space<vmem>>, vector<32x32xf32>
    %12 = arith.truncf %11 : vector<32x32xf32> to vector<32x32xbf16>
    %cst_8 = arith.constant dense<0.000000e+00> : vector<32x32xf32>
    %13 = tpu.matmul %10, %12, %cst_8 {dimension_numbers = #tpu.dot_dimension_numbers<[1], [0], [0], [1], [0, 0, 1, 1], [], []>} : vector<32x32xbf16>, vector<32x32xbf16>, vector<32x32xf32> -> vector<32x32xf32>
    %c0_9 = arith.constant 0 : index
    %c0_10 = arith.constant 0 : index
    %14 = vector.load %arg4[%c0_9, %c0_10] : memref<1x32xf32, #tpu.memory_space<vmem>>, vector<1x32xf32>
    %15 = vector.broadcast %14 : vector<1x32xf32> to vector<32x32xf32>
    %16 = arith.addf %13, %15 : vector<32x32xf32>
    %c0_11 = arith.constant 0 : index
    %c0_12 = arith.constant 0 : index
    %17 = vector.load %arg5[%c0_11, %c0_12] : memref<32x32xf32, #tpu.memory_space<vmem>>, vector<32x32xf32>
    tpu.vector_store %arg5[%c0_11, %c0_12], %16 {strides = array<i32>} : memref<32x32xf32, #tpu.memory_space<vmem>>, vector<32x32xf32>,
    return
  }
}

module attributes {stable_mosaic.version = 11 : i64} {
  func.func @kernel(%arg0: memref<32x8xf32, #tpu.memory_space<vmem>>, %arg1: memref<64x4xf32, #tpu.memory_space<vmem>>, %arg2: memref<64x32xbf16, #tpu.memory_space<vmem>>, %arg3: memref<64x32xbf16, #tpu.memory_space<vmem>>, %arg4: memref<32x64xbf16, #tpu.memory_space<vmem>>, %arg5: memref<32x1xf32, #tpu.memory_space<vmem>>, %arg6: memref<8x32xf32, #tpu.memory_space<vmem>>, %arg7: memref<4x32xf32, #tpu.memory_space<vmem>>, %arg8: memref<1x32xf32, #tpu.memory_space<vmem>>, %arg9: memref<32x32xf32, #tpu.memory_space<vmem>>, %arg10: memref<8x32xf32, #tpu.memory_space<vmem>>, %arg11: memref<1x32xf32, #tpu.memory_space<vmem>>, %arg12: memref<32x16xf32, #tpu.memory_space<vmem>>, %arg13: memref<32x16xf32, #tpu.memory_space<vmem>>, %arg14: memref<4x16xf32, #tpu.memory_space<vmem>>, %arg15: memref<1x16xf32, #tpu.memory_space<vmem>>, %arg16: memref<32x32xf32, #tpu.memory_space<vmem>>, %arg17: memref<64x16xf32, #tpu.memory_space<vmem>>) attributes {dimension_semantics = [], scalar_prefetch = 0 : i64, scratch_operands = 0 : i64, tpu.core_type = #tpu.core_type<tc>} {
    %c0 = arith.constant 0 : index
    %c0_0 = arith.constant 0 : index
    %0 = vector.load %arg0[%c0, %c0_0] : memref<32x8xf32, #tpu.memory_space<vmem>>, vector<32x8xf32>
    %1 = arith.truncf %0 : vector<32x8xf32> to vector<32x8xbf16>
    %c0_1 = arith.constant 0 : index
    %c0_2 = arith.constant 0 : index
    %2 = vector.load %arg1[%c0_1, %c0_2] : memref<64x4xf32, #tpu.memory_space<vmem>>, vector<64x4xf32>
    %3 = arith.truncf %2 : vector<64x4xf32> to vector<64x4xbf16>
    %c0_3 = arith.constant 0 : index
    %c0_4 = arith.constant 0 : index
    %4 = vector.load %arg2[%c0_3, %c0_4] : memref<64x32xbf16, #tpu.memory_space<vmem>>, vector<64x32xbf16>
    %c0_5 = arith.constant 0 : index
    %c0_6 = arith.constant 0 : index
    %5 = vector.load %arg3[%c0_5, %c0_6] : memref<64x32xbf16, #tpu.memory_space<vmem>>, vector<64x32xbf16>
    %c0_7 = arith.constant 0 : index
    %c0_8 = arith.constant 0 : index
    %6 = vector.load %arg4[%c0_7, %c0_8] : memref<32x64xbf16, #tpu.memory_space<vmem>>, vector<32x64xbf16>
    %c0_9 = arith.constant 0 : index
    %c0_10 = arith.constant 0 : index
    %7 = vector.load %arg6[%c0_9, %c0_10] : memref<8x32xf32, #tpu.memory_space<vmem>>, vector<8x32xf32>
    %8 = arith.truncf %7 : vector<8x32xf32> to vector<8x32xbf16>
    %cst = arith.constant dense<0.000000e+00> : vector<32x32xf32>
    %9 = tpu.matmul %1, %8, %cst {dimension_numbers = #tpu.dot_dimension_numbers<[1], [0], [0], [1], [0, 0, 1, 1], [], []>} : vector<32x8xbf16>, vector<8x32xbf16>, vector<32x32xf32> -> vector<32x32xf32>
    %10 = arith.truncf %9 : vector<32x32xf32> to vector<32x32xbf16>
    %cst_11 = arith.constant dense<0.000000e+00> : vector<64x32xf32>
    %11 = tpu.matmul %4, %10, %cst_11 {dimension_numbers = #tpu.dot_dimension_numbers<[1], [0], [0], [1], [0, 0, 1, 1], [], []>} : vector<64x32xbf16>, vector<32x32xbf16>, vector<64x32xf32> -> vector<64x32xf32>
    %c0_12 = arith.constant 0 : index
    %c0_13 = arith.constant 0 : index
    %12 = vector.load %arg7[%c0_12, %c0_13] : memref<4x32xf32, #tpu.memory_space<vmem>>, vector<4x32xf32>
    %13 = arith.truncf %12 : vector<4x32xf32> to vector<4x32xbf16>
    %cst_14 = arith.constant dense<0.000000e+00> : vector<64x32xf32>
    %14 = tpu.matmul %3, %13, %cst_14 {dimension_numbers = #tpu.dot_dimension_numbers<[1], [0], [0], [1], [0, 0, 1, 1], [], []>} : vector<64x4xbf16>, vector<4x32xbf16>, vector<64x32xf32> -> vector<64x32xf32>
    %15 = arith.addf %11, %14 : vector<64x32xf32>
    %c0_15 = arith.constant 0 : index
    %c0_16 = arith.constant 0 : index
    %16 = vector.load %arg8[%c0_15, %c0_16] : memref<1x32xf32, #tpu.memory_space<vmem>>, vector<1x32xf32>
    %17 = vector.broadcast %16 : vector<1x32xf32> to vector<64x32xf32>
    %18 = arith.addf %15, %17 : vector<64x32xf32>
    %cst_17 = arith.constant 0.000000e+00 : f32
    %19 = vector.broadcast %cst_17 : f32 to vector<64x32xf32>
    %20 = arith.maximumf %18, %19 : vector<64x32xf32>
    %21 = arith.truncf %20 : vector<64x32xf32> to vector<64x32xbf16>
    %cst_18 = arith.constant dense<0.000000e+00> : vector<32x32xf32>
    %22 = tpu.matmul %6, %21, %cst_18 {dimension_numbers = #tpu.dot_dimension_numbers<[1], [0], [0], [1], [0, 0, 1, 1], [], []>} : vector<32x64xbf16>, vector<64x32xbf16>, vector<32x32xf32> -> vector<32x32xf32>
    %c0_19 = arith.constant 0 : index
    %c0_20 = arith.constant 0 : index
    %23 = vector.load %arg5[%c0_19, %c0_20] : memref<32x1xf32, #tpu.memory_space<vmem>>, vector<32x1xf32>
    %24 = vector.broadcast %23 : vector<32x1xf32> to vector<32x32xf32>
    %25 = arith.mulf %22, %24 : vector<32x32xf32>
    %26 = arith.truncf %25 : vector<32x32xf32> to vector<32x32xbf16>
    %c0_21 = arith.constant 0 : index
    %c0_22 = arith.constant 0 : index
    %27 = vector.load %arg9[%c0_21, %c0_22] : memref<32x32xf32, #tpu.memory_space<vmem>>, vector<32x32xf32>
    %28 = arith.truncf %27 : vector<32x32xf32> to vector<32x32xbf16>
    %cst_23 = arith.constant dense<0.000000e+00> : vector<32x32xf32>
    %29 = tpu.matmul %26, %28, %cst_23 {dimension_numbers = #tpu.dot_dimension_numbers<[1], [0], [0], [1], [0, 0, 1, 1], [], []>} : vector<32x32xbf16>, vector<32x32xbf16>, vector<32x32xf32> -> vector<32x32xf32>
    %c0_24 = arith.constant 0 : index
    %c0_25 = arith.constant 0 : index
    %30 = vector.load %arg10[%c0_24, %c0_25] : memref<8x32xf32, #tpu.memory_space<vmem>>, vector<8x32xf32>
    %31 = arith.truncf %30 : vector<8x32xf32> to vector<8x32xbf16>
    %cst_26 = arith.constant dense<0.000000e+00> : vector<32x32xf32>
    %32 = tpu.matmul %1, %31, %cst_26 {dimension_numbers = #tpu.dot_dimension_numbers<[1], [0], [0], [1], [0, 0, 1, 1], [], []>} : vector<32x8xbf16>, vector<8x32xbf16>, vector<32x32xf32> -> vector<32x32xf32>
    %33 = arith.addf %29, %32 : vector<32x32xf32>
    %c0_27 = arith.constant 0 : index
    %c0_28 = arith.constant 0 : index
    %34 = vector.load %arg11[%c0_27, %c0_28] : memref<1x32xf32, #tpu.memory_space<vmem>>, vector<1x32xf32>
    %35 = vector.broadcast %34 : vector<1x32xf32> to vector<32x32xf32>
    %36 = arith.addf %33, %35 : vector<32x32xf32>
    %cst_29 = arith.constant 0.000000e+00 : f32
    %37 = vector.broadcast %cst_29 : f32 to vector<32x32xf32>
    %38 = arith.maximumf %36, %37 : vector<32x32xf32>
    %39 = arith.mulf %38, %38 : vector<32x32xf32>
    %cst_30 = arith.constant dense<0.000000e+00> : vector<32xf32>
    %40 = vector.multi_reduction <add>, %39, %cst_30 [1] : vector<32x32xf32> to vector<32xf32>
    %41 = vector.shape_cast %40 : vector<32xf32> to vector<32x1xf32>
    %cst_31 = arith.constant 1.000000e-24 : f32
    %42 = vector.broadcast %cst_31 : f32 to vector<32x1xf32>
    %43 = arith.maximumf %41, %42 : vector<32x1xf32>
    %44 = math.rsqrt %43 : vector<32x1xf32>
    %45 = vector.broadcast %44 : vector<32x1xf32> to vector<32x32xf32>
    %46 = arith.mulf %38, %45 : vector<32x32xf32>
    %c0_32 = arith.constant 0 : index
    %c0_33 = arith.constant 0 : index
    %47 = vector.load %arg16[%c0_32, %c0_33] : memref<32x32xf32, #tpu.memory_space<vmem>>, vector<32x32xf32>
    tpu.vector_store %arg16[%c0_32, %c0_33], %46 {strides = array<i32>} : memref<32x32xf32, #tpu.memory_space<vmem>>, vector<32x32xf32>,
    %48 = arith.truncf %46 : vector<32x32xf32> to vector<32x32xbf16>
    %c0_34 = arith.constant 0 : index
    %c0_35 = arith.constant 0 : index
    %49 = vector.load %arg12[%c0_34, %c0_35] : memref<32x16xf32, #tpu.memory_space<vmem>>, vector<32x16xf32>
    %50 = arith.truncf %49 : vector<32x16xf32> to vector<32x16xbf16>
    %cst_36 = arith.constant dense<0.000000e+00> : vector<32x16xf32>
    %51 = tpu.matmul %48, %50, %cst_36 {dimension_numbers = #tpu.dot_dimension_numbers<[1], [0], [0], [1], [0, 0, 1, 1], [], []>} : vector<32x32xbf16>, vector<32x16xbf16>, vector<32x16xf32> -> vector<32x16xf32>
    %c0_37 = arith.constant 0 : index
    %c0_38 = arith.constant 0 : index
    %52 = vector.load %arg13[%c0_37, %c0_38] : memref<32x16xf32, #tpu.memory_space<vmem>>, vector<32x16xf32>
    %53 = arith.truncf %52 : vector<32x16xf32> to vector<32x16xbf16>
    %cst_39 = arith.constant dense<0.000000e+00> : vector<32x16xf32>
    %54 = tpu.matmul %48, %53, %cst_39 {dimension_numbers = #tpu.dot_dimension_numbers<[1], [0], [0], [1], [0, 0, 1, 1], [], []>} : vector<32x32xbf16>, vector<32x16xbf16>, vector<32x16xf32> -> vector<32x16xf32>
    %55 = arith.truncf %51 : vector<32x16xf32> to vector<32x16xbf16>
    %cst_40 = arith.constant dense<0.000000e+00> : vector<64x16xf32>
    %56 = tpu.matmul %4, %55, %cst_40 {dimension_numbers = #tpu.dot_dimension_numbers<[1], [0], [0], [1], [0, 0, 1, 1], [], []>} : vector<64x32xbf16>, vector<32x16xbf16>, vector<64x16xf32> -> vector<64x16xf32>
    %57 = arith.truncf %54 : vector<32x16xf32> to vector<32x16xbf16>
    %cst_41 = arith.constant dense<0.000000e+00> : vector<64x16xf32>
    %58 = tpu.matmul %5, %57, %cst_41 {dimension_numbers = #tpu.dot_dimension_numbers<[1], [0], [0], [1], [0, 0, 1, 1], [], []>} : vector<64x32xbf16>, vector<32x16xbf16>, vector<64x16xf32> -> vector<64x16xf32>
    %59 = arith.addf %56, %58 : vector<64x16xf32>
    %c0_42 = arith.constant 0 : index
    %c0_43 = arith.constant 0 : index
    %60 = vector.load %arg14[%c0_42, %c0_43] : memref<4x16xf32, #tpu.memory_space<vmem>>, vector<4x16xf32>
    %61 = arith.truncf %60 : vector<4x16xf32> to vector<4x16xbf16>
    %cst_44 = arith.constant dense<0.000000e+00> : vector<64x16xf32>
    %62 = tpu.matmul %3, %61, %cst_44 {dimension_numbers = #tpu.dot_dimension_numbers<[1], [0], [0], [1], [0, 0, 1, 1], [], []>} : vector<64x4xbf16>, vector<4x16xbf16>, vector<64x16xf32> -> vector<64x16xf32>
    %63 = arith.addf %59, %62 : vector<64x16xf32>
    %c0_45 = arith.constant 0 : index
    %c0_46 = arith.constant 0 : index
    %64 = vector.load %arg15[%c0_45, %c0_46] : memref<1x16xf32, #tpu.memory_space<vmem>>, vector<1x16xf32>
    %65 = vector.broadcast %64 : vector<1x16xf32> to vector<64x16xf32>
    %66 = arith.addf %63, %65 : vector<64x16xf32>
    %cst_47 = arith.constant 0.000000e+00 : f32
    %67 = vector.broadcast %cst_47 : f32 to vector<64x16xf32>
    %68 = arith.maximumf %66, %67 : vector<64x16xf32>
    %c0_48 = arith.constant 0 : index
    %c0_49 = arith.constant 0 : index
    %69 = vector.load %arg17[%c0_48, %c0_49] : memref<64x16xf32, #tpu.memory_space<vmem>>, vector<64x16xf32>
    tpu.vector_store %arg17[%c0_48, %c0_49], %68 {strides = array<i32>} : memref<64x16xf32, #tpu.memory_space<vmem>>, vector<64x16xf32>,
    return
  }
}

module attributes {stable_mosaic.version = 11 : i64} {
  func.func @kernel(%arg0: memref<32x32xf32, #tpu.memory_space<vmem>>, %arg1: memref<64x16xf32, #tpu.memory_space<vmem>>, %arg2: memref<64x32xbf16, #tpu.memory_space<vmem>>, %arg3: memref<64x32xbf16, #tpu.memory_space<vmem>>, %arg4: memref<32x64xbf16, #tpu.memory_space<vmem>>, %arg5: memref<32x1xf32, #tpu.memory_space<vmem>>, %arg6: memref<32x32xf32, #tpu.memory_space<vmem>>, %arg7: memref<16x32xf32, #tpu.memory_space<vmem>>, %arg8: memref<1x32xf32, #tpu.memory_space<vmem>>, %arg9: memref<32x32xf32, #tpu.memory_space<vmem>>, %arg10: memref<32x32xf32, #tpu.memory_space<vmem>>, %arg11: memref<1x32xf32, #tpu.memory_space<vmem>>, %arg12: memref<32x16xf32, #tpu.memory_space<vmem>>, %arg13: memref<32x16xf32, #tpu.memory_space<vmem>>, %arg14: memref<16x16xf32, #tpu.memory_space<vmem>>, %arg15: memref<1x16xf32, #tpu.memory_space<vmem>>, %arg16: memref<32x32xf32, #tpu.memory_space<vmem>>, %arg17: memref<64x16xf32, #tpu.memory_space<vmem>>) attributes {dimension_semantics = [], scalar_prefetch = 0 : i64, scratch_operands = 0 : i64, tpu.core_type = #tpu.core_type<tc>} {
    %c0 = arith.constant 0 : index
    %c0_0 = arith.constant 0 : index
    %0 = vector.load %arg0[%c0, %c0_0] : memref<32x32xf32, #tpu.memory_space<vmem>>, vector<32x32xf32>
    %1 = arith.truncf %0 : vector<32x32xf32> to vector<32x32xbf16>
    %c0_1 = arith.constant 0 : index
    %c0_2 = arith.constant 0 : index
    %2 = vector.load %arg1[%c0_1, %c0_2] : memref<64x16xf32, #tpu.memory_space<vmem>>, vector<64x16xf32>
    %3 = arith.truncf %2 : vector<64x16xf32> to vector<64x16xbf16>
    %c0_3 = arith.constant 0 : index
    %c0_4 = arith.constant 0 : index
    %4 = vector.load %arg2[%c0_3, %c0_4] : memref<64x32xbf16, #tpu.memory_space<vmem>>, vector<64x32xbf16>
    %c0_5 = arith.constant 0 : index
    %c0_6 = arith.constant 0 : index
    %5 = vector.load %arg3[%c0_5, %c0_6] : memref<64x32xbf16, #tpu.memory_space<vmem>>, vector<64x32xbf16>
    %c0_7 = arith.constant 0 : index
    %c0_8 = arith.constant 0 : index
    %6 = vector.load %arg4[%c0_7, %c0_8] : memref<32x64xbf16, #tpu.memory_space<vmem>>, vector<32x64xbf16>
    %c0_9 = arith.constant 0 : index
    %c0_10 = arith.constant 0 : index
    %7 = vector.load %arg6[%c0_9, %c0_10] : memref<32x32xf32, #tpu.memory_space<vmem>>, vector<32x32xf32>
    %8 = arith.truncf %7 : vector<32x32xf32> to vector<32x32xbf16>
    %cst = arith.constant dense<0.000000e+00> : vector<32x32xf32>
    %9 = tpu.matmul %1, %8, %cst {dimension_numbers = #tpu.dot_dimension_numbers<[1], [0], [0], [1], [0, 0, 1, 1], [], []>} : vector<32x32xbf16>, vector<32x32xbf16>, vector<32x32xf32> -> vector<32x32xf32>
    %10 = arith.truncf %9 : vector<32x32xf32> to vector<32x32xbf16>
    %cst_11 = arith.constant dense<0.000000e+00> : vector<64x32xf32>
    %11 = tpu.matmul %4, %10, %cst_11 {dimension_numbers = #tpu.dot_dimension_numbers<[1], [0], [0], [1], [0, 0, 1, 1], [], []>} : vector<64x32xbf16>, vector<32x32xbf16>, vector<64x32xf32> -> vector<64x32xf32>
    %c0_12 = arith.constant 0 : index
    %c0_13 = arith.constant 0 : index
    %12 = vector.load %arg7[%c0_12, %c0_13] : memref<16x32xf32, #tpu.memory_space<vmem>>, vector<16x32xf32>
    %13 = arith.truncf %12 : vector<16x32xf32> to vector<16x32xbf16>
    %cst_14 = arith.constant dense<0.000000e+00> : vector<64x32xf32>
    %14 = tpu.matmul %3, %13, %cst_14 {dimension_numbers = #tpu.dot_dimension_numbers<[1], [0], [0], [1], [0, 0, 1, 1], [], []>} : vector<64x16xbf16>, vector<16x32xbf16>, vector<64x32xf32> -> vector<64x32xf32>
    %15 = arith.addf %11, %14 : vector<64x32xf32>
    %c0_15 = arith.constant 0 : index
    %c0_16 = arith.constant 0 : index
    %16 = vector.load %arg8[%c0_15, %c0_16] : memref<1x32xf32, #tpu.memory_space<vmem>>, vector<1x32xf32>
    %17 = vector.broadcast %16 : vector<1x32xf32> to vector<64x32xf32>
    %18 = arith.addf %15, %17 : vector<64x32xf32>
    %cst_17 = arith.constant 0.000000e+00 : f32
    %19 = vector.broadcast %cst_17 : f32 to vector<64x32xf32>
    %20 = arith.maximumf %18, %19 : vector<64x32xf32>
    %21 = arith.truncf %20 : vector<64x32xf32> to vector<64x32xbf16>
    %cst_18 = arith.constant dense<0.000000e+00> : vector<32x32xf32>
    %22 = tpu.matmul %6, %21, %cst_18 {dimension_numbers = #tpu.dot_dimension_numbers<[1], [0], [0], [1], [0, 0, 1, 1], [], []>} : vector<32x64xbf16>, vector<64x32xbf16>, vector<32x32xf32> -> vector<32x32xf32>
    %c0_19 = arith.constant 0 : index
    %c0_20 = arith.constant 0 : index
    %23 = vector.load %arg5[%c0_19, %c0_20] : memref<32x1xf32, #tpu.memory_space<vmem>>, vector<32x1xf32>
    %24 = vector.broadcast %23 : vector<32x1xf32> to vector<32x32xf32>
    %25 = arith.mulf %22, %24 : vector<32x32xf32>
    %26 = arith.truncf %25 : vector<32x32xf32> to vector<32x32xbf16>
    %c0_21 = arith.constant 0 : index
    %c0_22 = arith.constant 0 : index
    %27 = vector.load %arg9[%c0_21, %c0_22] : memref<32x32xf32, #tpu.memory_space<vmem>>, vector<32x32xf32>
    %28 = arith.truncf %27 : vector<32x32xf32> to vector<32x32xbf16>
    %cst_23 = arith.constant dense<0.000000e+00> : vector<32x32xf32>
    %29 = tpu.matmul %26, %28, %cst_23 {dimension_numbers = #tpu.dot_dimension_numbers<[1], [0], [0], [1], [0, 0, 1, 1], [], []>} : vector<32x32xbf16>, vector<32x32xbf16>, vector<32x32xf32> -> vector<32x32xf32>
    %c0_24 = arith.constant 0 : index
    %c0_25 = arith.constant 0 : index
    %30 = vector.load %arg10[%c0_24, %c0_25] : memref<32x32xf32, #tpu.memory_space<vmem>>, vector<32x32xf32>
    %31 = arith.truncf %30 : vector<32x32xf32> to vector<32x32xbf16>
    %cst_26 = arith.constant dense<0.000000e+00> : vector<32x32xf32>
    %32 = tpu.matmul %1, %31, %cst_26 {dimension_numbers = #tpu.dot_dimension_numbers<[1], [0], [0], [1], [0, 0, 1, 1], [], []>} : vector<32x32xbf16>, vector<32x32xbf16>, vector<32x32xf32> -> vector<32x32xf32>
    %33 = arith.addf %29, %32 : vector<32x32xf32>
    %c0_27 = arith.constant 0 : index
    %c0_28 = arith.constant 0 : index
    %34 = vector.load %arg11[%c0_27, %c0_28] : memref<1x32xf32, #tpu.memory_space<vmem>>, vector<1x32xf32>
    %35 = vector.broadcast %34 : vector<1x32xf32> to vector<32x32xf32>
    %36 = arith.addf %33, %35 : vector<32x32xf32>
    %cst_29 = arith.constant 0.000000e+00 : f32
    %37 = vector.broadcast %cst_29 : f32 to vector<32x32xf32>
    %38 = arith.maximumf %36, %37 : vector<32x32xf32>
    %39 = arith.mulf %38, %38 : vector<32x32xf32>
    %cst_30 = arith.constant dense<0.000000e+00> : vector<32xf32>
    %40 = vector.multi_reduction <add>, %39, %cst_30 [1] : vector<32x32xf32> to vector<32xf32>
    %41 = vector.shape_cast %40 : vector<32xf32> to vector<32x1xf32>
    %cst_31 = arith.constant 1.000000e-24 : f32
    %42 = vector.broadcast %cst_31 : f32 to vector<32x1xf32>
    %43 = arith.maximumf %41, %42 : vector<32x1xf32>
    %44 = math.rsqrt %43 : vector<32x1xf32>
    %45 = vector.broadcast %44 : vector<32x1xf32> to vector<32x32xf32>
    %46 = arith.mulf %38, %45 : vector<32x32xf32>
    %c0_32 = arith.constant 0 : index
    %c0_33 = arith.constant 0 : index
    %47 = vector.load %arg16[%c0_32, %c0_33] : memref<32x32xf32, #tpu.memory_space<vmem>>, vector<32x32xf32>
    tpu.vector_store %arg16[%c0_32, %c0_33], %46 {strides = array<i32>} : memref<32x32xf32, #tpu.memory_space<vmem>>, vector<32x32xf32>,
    %48 = arith.truncf %46 : vector<32x32xf32> to vector<32x32xbf16>
    %c0_34 = arith.constant 0 : index
    %c0_35 = arith.constant 0 : index
    %49 = vector.load %arg12[%c0_34, %c0_35] : memref<32x16xf32, #tpu.memory_space<vmem>>, vector<32x16xf32>
    %50 = arith.truncf %49 : vector<32x16xf32> to vector<32x16xbf16>
    %cst_36 = arith.constant dense<0.000000e+00> : vector<32x16xf32>
    %51 = tpu.matmul %48, %50, %cst_36 {dimension_numbers = #tpu.dot_dimension_numbers<[1], [0], [0], [1], [0, 0, 1, 1], [], []>} : vector<32x32xbf16>, vector<32x16xbf16>, vector<32x16xf32> -> vector<32x16xf32>
    %c0_37 = arith.constant 0 : index
    %c0_38 = arith.constant 0 : index
    %52 = vector.load %arg13[%c0_37, %c0_38] : memref<32x16xf32, #tpu.memory_space<vmem>>, vector<32x16xf32>
    %53 = arith.truncf %52 : vector<32x16xf32> to vector<32x16xbf16>
    %cst_39 = arith.constant dense<0.000000e+00> : vector<32x16xf32>
    %54 = tpu.matmul %48, %53, %cst_39 {dimension_numbers = #tpu.dot_dimension_numbers<[1], [0], [0], [1], [0, 0, 1, 1], [], []>} : vector<32x32xbf16>, vector<32x16xbf16>, vector<32x16xf32> -> vector<32x16xf32>
    %55 = arith.truncf %51 : vector<32x16xf32> to vector<32x16xbf16>
    %cst_40 = arith.constant dense<0.000000e+00> : vector<64x16xf32>
    %56 = tpu.matmul %4, %55, %cst_40 {dimension_numbers = #tpu.dot_dimension_numbers<[1], [0], [0], [1], [0, 0, 1, 1], [], []>} : vector<64x32xbf16>, vector<32x16xbf16>, vector<64x16xf32> -> vector<64x16xf32>
    %57 = arith.truncf %54 : vector<32x16xf32> to vector<32x16xbf16>
    %cst_41 = arith.constant dense<0.000000e+00> : vector<64x16xf32>
    %58 = tpu.matmul %5, %57, %cst_41 {dimension_numbers = #tpu.dot_dimension_numbers<[1], [0], [0], [1], [0, 0, 1, 1], [], []>} : vector<64x32xbf16>, vector<32x16xbf16>, vector<64x16xf32> -> vector<64x16xf32>
    %59 = arith.addf %56, %58 : vector<64x16xf32>
    %c0_42 = arith.constant 0 : index
    %c0_43 = arith.constant 0 : index
    %60 = vector.load %arg14[%c0_42, %c0_43] : memref<16x16xf32, #tpu.memory_space<vmem>>, vector<16x16xf32>
    %61 = arith.truncf %60 : vector<16x16xf32> to vector<16x16xbf16>
    %cst_44 = arith.constant dense<0.000000e+00> : vector<64x16xf32>
    %62 = tpu.matmul %3, %61, %cst_44 {dimension_numbers = #tpu.dot_dimension_numbers<[1], [0], [0], [1], [0, 0, 1, 1], [], []>} : vector<64x16xbf16>, vector<16x16xbf16>, vector<64x16xf32> -> vector<64x16xf32>
    %63 = arith.addf %59, %62 : vector<64x16xf32>
    %c0_45 = arith.constant 0 : index
    %c0_46 = arith.constant 0 : index
    %64 = vector.load %arg15[%c0_45, %c0_46] : memref<1x16xf32, #tpu.memory_space<vmem>>, vector<1x16xf32>
    %65 = vector.broadcast %64 : vector<1x16xf32> to vector<64x16xf32>
    %66 = arith.addf %63, %65 : vector<64x16xf32>
    %cst_47 = arith.constant 0.000000e+00 : f32
    %67 = vector.broadcast %cst_47 : f32 to vector<64x16xf32>
    %68 = arith.maximumf %66, %67 : vector<64x16xf32>
    %c0_48 = arith.constant 0 : index
    %c0_49 = arith.constant 0 : index
    %69 = vector.load %arg17[%c0_48, %c0_49] : memref<64x16xf32, #tpu.memory_space<vmem>>, vector<64x16xf32>
    tpu.vector_store %arg17[%c0_48, %c0_49], %68 {strides = array<i32>} : memref<64x16xf32, #tpu.memory_space<vmem>>, vector<64x16xf32>,
    return
  }
}

</mosaic_0001>

<bundles_post_ra>
// kernel: egsage_stack_forward.5
= control target key start
LH: loop header
LB: loop body
LE: loop exit
PB: predicated region body
PF: predicated region fallthrough
CT: control target
= control target key end

     0   :  { %vm41_vm0 = vcmask 261120   ;;  %s332_s0 = inlined_call_operand.vmem [shape: f32[32,32], index: 0, kind: input, shape index: {}]   ;;  %s333_s1 = inlined_call_operand.vmem [shape: f32[32,32], index: 1, kind: input, shape index: {}]   ;;  %s334_s2 = inlined_call_operand.vmem [shape: f32[1,32], index: 2, kind: input, shape index: {}]   ;;  %s335_s3 = inlined_call_operand.vmem [shape: f32[32,32], index: 3, kind: input, shape index: {}]   ;;  %s336_s4 = inlined_call_operand.vmem [shape: f32[1,32], index: 4, kind: input, shape index: {}]   ;;  %s337_s5 = inlined_call_operand.hbm [shape: f32[32,32], index: 5, kind: output, shape index: {}]  }
   0x1   :  { %v30_v0 = vld [vmem:[%s333_s1 + $0x10] sm:$0xff]  ;;  %v31_v1 = vld [vmem:[%s333_s1 + $0x18] sm:$0xff]  ;;  %v28_v2 = vld [vmem:[%s333_s1] sm:$0xff] }
   0x2   :  { %v33_v3 = vpack.c.bf16 %v31_v1, %v30_v0  ;;  %v29_v4 = vld [vmem:[%s333_s1 + $0x8] sm:$0xff]  ;;  %v22_v5 = vld [vmem:[%s332_s0] sm:$0xff] }
   0x3   :  { %v23_v6 = vld [vmem:[%s332_s0 + $0x8] sm:$0xff]  ;;  %v32_v7 = vpack.c.bf16 %v29_v4, %v28_v2 }
   0x4   :  { %v26_v8 = vpack.c.bf16 %v23_v6, %v22_v5 }
   0x5   :  { %10 = vsyncpa [#allocation3], 0  ;;  %205 = vmatprep.subr.bf16.mxu0 %v33_v3  ;;  %v24_v9 = vld [vmem:[%s332_s0 + $0x10] sm:$0xff]  ;;  %v25_v10 = vld [vmem:[%s332_s0 + $0x18] sm:$0xff] }
   0x6   :  { %206 = vmatpush3.bf16.msra.mxu0 %v33_v3  ;;  %209 = vmatprep.mubr.msk.bf16.mxu0 %vm41_vm0, %v26_v8  ;;  %v27_v11 = vpack.c.bf16 %v25_v10, %v24_v9  ;;  %v105_v12 = vld [vmem:[%s335_s3 + $0x10] sm:$0xff]  ;;  %v106_v13 = vld [vmem:[%s335_s3 + $0x18] sm:$0xff]  ;;  %v103_v15 = vld [vmem:[%s335_s3] sm:$0xff] }
   0x7   :  { %207 = vmatprep.subr.bf16.mxu0 %v32_v7  ;;  %v108_v14 = vpack.c.bf16 %v106_v13, %v105_v12  ;;  %v104_v16 = vld [vmem:[%s335_s3 + $0x8] sm:$0xff]  ;;  %v191_v20 = vld [vmem:[%s334_s2] ss:$0 sm:$0xff]  ;;  %s246_s2 = smov [#allocation2]  }
   0x8   :  { %v107_v17 = vpack.c.bf16 %v104_v16, %v103_v15  ;;  %v194_v33 = vld [vmem:[%s336_s4] ss:$0 sm:$0xff]  ;;  %s180_s18 = sshll.u32 %s246_s2, 4  ;;  %s181_s18 = int_to_ptr.vmem [resolvable:$true] %s180_s18 }
   0x9   :  { %213 = vmatprep.subr.bf16.mxu1 %v108_v14  ;;  %s224_s4 = scalar_lea.vmem %s181_s18, 512  ;;  %p229_p1 = scmp.lt.s32.totalorder %s181_s18, %s181_s18 }
   0xa   :  { %208 = vmatpush3.bf16.msra.mxu0 %v32_v7  ;;  %214 = vmatpush3.bf16.msra.mxu1 %v108_v14  ;;  %p225_p0 = scmp.ne.s32.totalorder %s181_s18, %s224_s4  ;;  %p230_p2 = scmp.lt.s32.totalorder %s224_s4, %s224_s4 }
   0xb   :  { %215 = vmatprep.subr.bf16.mxu1 %v107_v17 }
   0xc   :  { %p231_p3 = por %p230_p2, %p229_p1 }
   0xd   :  { %210 = vmatmul.mubr.msk.bf16.vlgmr.msra.gmra.mxu0 %vm41_vm0, %v27_v11 }
   0xe   :  { %216 = vmatpush3.bf16.msra.mxu1 %v107_v17  ;;  %p232_p4 = pnand %p231_p3, %p225_p0 }
  0xcd   :  { %v211_v18 = vpop.f32.mrf.mxu0 }
  0xce   :  { %v91_v24 = vadd.f32 %v211_v18, %v191_v20 }
  0xcf   :  { %v82_v19 = vpop.f32.mrf.mxu0 }
  0xd0   :  { %v83_v22 = vadd.f32 %v191_v20, %v82_v19  ;;  %v99_v30 = vmax.f32 %v91_v24, 0.0 }
  0xd1   :  { %v212_v21 = vpop.f32.mrf.mxu0 }
  0xd2   :  { %v94_v23 = vadd.f32 %v212_v21, %v191_v20  ;;  %v97_v28 = vmax.f32 %v83_v22, 0.0 }
  0xd3   :  { %v85_v25 = vpop.f32.mrf.mxu0 }
  0xd4   :  { %v86_v26 = vadd.f32 %v191_v20, %v85_v25  ;;  %v100_v27 = vmax.f32 %v94_v23, 0.0 }
  0xd6   :  { %v98_v29 = vmax.f32 %v86_v26, 0.0  ;;  %v102_v32 = vpack.c.bf16 %v100_v27, %v99_v30 }
  0xd8   :  { %v101_v31 = vpack.c.bf16 %v98_v29, %v97_v28 }
  0xda   :  { %217 = vmatprep.mubr.msk.bf16.mxu1 %vm41_vm0, %v101_v31 }
  0xdb   :  { %218 = vmatmul.mubr.msk.bf16.vlgmr.msra.gmra.mxu1 %vm41_vm0, %v102_v32 }
 0x19b   :  { %v219_v34 = vpop.f32.mrf.mxu1 }
 0x19c   :  { %v165_v35 = vadd.f32 %v219_v34, %v194_v33 }
 0x19d   :  { %v156_v36 = vpop.f32.mrf.mxu1 }
 0x19e   :  { %173 = vst.msk [vmem:[#allocation2 + $0x10] sm:$0xff] %vm41_vm0, %v165_v35  ;;  %v157_v37 = vadd.f32 %v194_v33, %v156_v36 }
 0x19f   :  { %v220_v38 = vpop.f32.mrf.mxu1 }
 0x1a0   :  { %171 = vst.msk [vmem:[#allocation2] sm:$0xff] %vm41_vm0, %v157_v37  ;;  %v168_v39 = vadd.f32 %v220_v38, %v194_v33 }
 0x1a1   :  { %v159_v40 = vpop.f32.mrf.mxu1 }
 0x1a2   :  { %174 = vst.msk [vmem:[#allocation2 + $0x18] sm:$0xff] %vm41_vm0, %v168_v39  ;;  %v160_v41 = vadd.f32 %v194_v33, %v159_v40 }
 0x1a4   :  { %172 = vst.msk [vmem:[#allocation2 + $0x8] sm:$0xff] %vm41_vm0, %v160_v41 }
 0x1a5   :  { %235 = shalt.err (!%p232_p4)
}
 0x1a6   :  { %s247_s19 = smov 128   ;;  %s248_s20 = smov 8  }
 0x1a7   :  { %186 = dma.vmem_to_hbm [thread:$0]  %s181_s18, 512, %s337_s5, [#allocation3], %s247_s19, %s247_s19, %s248_s20  }
 0x1a8   :  { %244 = dma.done.wait [#allocation3], 512  }
 0x1a9   :  { %245 = vsyncadd [#allocation3], 4294966784 }
 0x1aa   :  { %190 = vsyncpa [#allocation3], 1 }

// kernel: egsage_stack_forward.3
= control target key start
LH: loop header
LB: loop body
LE: loop exit
PB: predicated region body
PF: predicated region fallthrough
CT: control target
= control target key end

     0   :  { %vm103_vm0 = vcmask 1043456   ;;  %vm96_vm1 = vcmask 64512   ;;  %vm173_vm2 = vcmask 1041408   ;;  %vm160_vm3 = vcmask 31744   ;;  %s1611_s6 = inlined_call_operand.vmem [shape: f32[8,32], index: 6, kind: input, shape index: {}]   ;;  %s1612_s0 = inlined_call_operand.vmem [shape: f32[32,8], index: 0, kind: input, shape index: {}]   ;;  %s1613_s7 = inlined_call_operand.vmem [shape: f32[4,32], index: 7, kind: input, shape index: {}]   ;;  %s1614_s1 = inlined_call_operand.vmem [shape: f32[64,4], index: 1, kind: input, shape index: {}]   ;;  %s1615_s2 = inlined_call_operand.vmem [shape: bf16[64,32], index: 2, kind: input, shape index: {}]   ;;  %s1616_s4 = inlined_call_operand.vmem [shape: bf16[32,64], index: 4, kind: input, shape index: {}]   ;;  %s1617_s5 = inlined_call_operand.vmem [shape: f32[32,1], index: 5, kind: input, shape index: {}]   ;;  %s1618_s8 = inlined_call_operand.vmem [shape: f32[1,32], index: 8, kind: input, shape index: {}]   ;;  %s1619_s10 = inlined_call_operand.vmem [shape: f32[8,32], index: 10, kind: input, shape index: {}]   ;;  %s1620_s9 = inlined_call_operand.vmem [shape: f32[32,32], index: 9, kind: input, shape index: {}]   ;;  %s1621_s11 = inlined_call_operand.vmem [shape: f32[1,32], index: 11, kind: input, shape index: {}]   ;;  %s1622_s12 = inlined_call_operand.vmem [shape: f32[32,16], index: 12, kind: input, shape index: {}]   ;;  %s1623_s13 = inlined_call_operand.vmem [shape: f32[32,16], index: 13, kind: input, shape index: {}]   ;;  %s1624_s16 = inlined_call_operand.vmem [shape: f32[32,32], index: 16, kind: output, shape index: {0}]   ;;  %s1625_s3 = inlined_call_operand.vmem [shape: bf16[64,32], index: 3, kind: input, shape index: {}]   ;;  %s1626_s14 = inlined_call_operand.vmem [shape: f32[4,16], index: 14, kind: input, shape index: {}]   ;;  %s1627_s15 = inlined_call_operand.vmem [shape: f32[1,16], index: 15, kind: input, shape index: {}]   ;;  %s1628_s17 = inlined_call_operand.vmem [shape: f32[64,16], index: 17, kind: output, shape index: {1}]  }
   0x1   :  { %1630 = sst [smem:[#allocation2_spill]] %s1611_s6  ;;  %v158_v9 = vld [vmem:[%s1613_s7] sm:$0xf]  ;;  %v63_v13 = vld [vmem:[%s1614_s1 + $0x8] sm:$0xff]  ;;  %v64_v15 = vld [vmem:[%s1614_s1 + $0x10] sm:$0xff]  ;;  %vm262_vm4 = vcmask 261120  }
   0x2   :  { %1631 = sst [smem:[#allocation3_spill]] %s1612_s0  ;;  %v159_v10 = vpack.c.bf16 %v158_v9, %v158_v9  ;;  %v62_v12 = vld [vmem:[%s1614_s1] sm:$0xff]  ;;  %v65_v16 = vld [vmem:[%s1614_s1 + $0x18] sm:$0xff]  ;;  %v67_v20 = vld [vmem:[%s1614_s1 + $0x28] sm:$0xff]  ;;  %vm377_vm5 = vcmask 523264   ;;  %v1253_v35 = vmov 0  }
   0x3   :  { %s1632_s26 = sld [smem:[#allocation2_spill]]  ;;  %v1380_v14 = vpack.c.bf16 %v63_v13, %v62_v12  ;;  %v1388_v17 = vpack.c.bf16 %v65_v16, %v64_v15  ;;  %v1397_v18 = vld [vmem:[%s1615_s2] sm:$0xff]   ;;  %v68_v21 = vld [vmem:[%s1614_s1 + $0x30] sm:$0xff]  ;;  %v69_v23 = vld [vmem:[%s1614_s1 + $0x38] sm:$0xff]  ;;  %1233 = vset.pattern.permute.xlu0 %v1253_v35  ;;  %1234 = vset.pattern.permute.xlu1 %v1253_v35  ;;  %vm1010_vm6 = vcmask 130048  }
   0x4   :  { %s1633_s29 = sld [smem:[#allocation3_spill]]  ;;  %1229 = vmatprep.subr.msk.bf16.mxu1 %vm173_vm2, %v159_v10  ;;  %v175_v11 = vsel %vm173_vm2, %v159_v10, 0  ;;  %v66_v19 = vld [vmem:[%s1614_s1 + $0x20] sm:$0xff]  ;;  %v1415_v24 = vpack.c.bf16 %v69_v23, %v68_v21  ;;  %v1424_v31 = vld [vmem:[%s1615_s2 + $0x8] sm:$0xff]   ;;  %v1429_v32 = vld [vmem:[%s1615_s2 + $0x10] sm:$0xff]  }
   0x5   :  { %1131 = vmatpush3.bf16.msra.mxu1 %v175_v11  ;;  %1132 = vmatprep.mubr.msk.bf16.mxu1 %vm160_vm3, %v1380_v14  ;;  %v1410_v22 = vpack.c.bf16 %v67_v20, %v66_v19  ;;  %v1438_v33 = vld [vmem:[%s1615_s2 + $0x18] sm:$0xff]   ;;  %v1239_v34 = vld [vmem:[%s1616_s4] sm:$0xff]   ;;  %v435_v37 = vld [vmem:[%s1617_s5 + $0x10] sm:$0xff] }
   0x6   :  { %v433_v36 = vld [vmem:[%s1617_s5] sm:$0xff]  ;;  %449 = vperm.xlu1 %1234, %v435_v37   ;;  %v434_v38 = vld [vmem:[%s1617_s5 + $0x8] sm:$0xff]  ;;  %v436_v39 = vld [vmem:[%s1617_s5 + $0x18] sm:$0xff] }
   0x7   :  { %439 = vperm.xlu0 %1233, %v433_v36   ;;  %v1041_v55 = vld [vmem:[%s1618_s8] ss:$0 sm:$0xff]  ;;  %v465_v35 = vld [vmem:[%s1620_s9 + $0x10] sm:$0xff]  ;;  %v466_v36 = vld [vmem:[%s1620_s9 + $0x18] sm:$0xff] }
   0x8   :  { %1133 = vmatmul.mubr.msk.bf16.vlgmr.msra.gmra.mxu1 %vm160_vm3, %v1388_v17  ;;  %v468_v37 = vpack.c.bf16 %v466_v36, %v465_v35  ;;  %v628_v35 = vld [vmem:[%s1622_s12 + $0x8] sm:$0xff]  ;;  %v688_v36 = vld [vmem:[%s1623_s13] sm:$0xff] }
   0x9   :  { %v94_v0 = vld [vmem:[%s1632_s26] sm:$0xff]  ;;  %1136 = vmatprep.mubr.msk.bf16.mxu1 %vm160_vm3, %v1410_v22 }
   0xa   :  { %v56_v1 = vld [vmem:[%s1633_s29] sm:$0xff]  ;;  %v57_v2 = vld [vmem:[%s1633_s29 + $0x8] sm:$0xff]  ;;  %v95_v3 = vpack.c.bf16 %v94_v0, %v94_v0  ;;  %v58_v5 = vld [vmem:[%s1633_s29 + $0x10] sm:$0xff]  ;;  %454 = vperm.xlu1 %1234, %v436_v39  }
   0xb   :  { %v1353_v4 = vpack.c.bf16 %v57_v2, %v56_v1  ;;  %v59_v6 = vld [vmem:[%s1633_s29 + $0x18] sm:$0xff]  ;;  %444 = vperm.xlu0 %1233, %v434_v38   ;;  %v463_v38 = vld [vmem:[%s1620_s9] sm:$0xff] }
   0xc   :  { %1228 = vmatprep.subr.msk.bf16.mxu0 %vm103_vm0, %v95_v3  ;;  %v105_v7 = vsel %vm103_vm0, %v95_v3, 0  ;;  %v1365_v8 = vpack.c.bf16 %v59_v6, %v58_v5 }
   0xd   :  { %1126 = vmatprep.mubr.msk.bf16.mxu0 %vm96_vm1, %v1353_v4  ;;  %1125 = vmatpush3.bf16.msra.mxu0 %v105_v7 }
  0x10   :  { %1127 = vmatmul.mubr.msk.bf16.vlgmr.msra.gmra.mxu0 %vm96_vm1, %v1365_v8  ;;  %1137 = vmatmul.mubr.msk.bf16.gmra.mxu1 %vm160_vm3, %v1415_v24 }
  0x11   :  { %1144 = vmatprep.mubr.msk.bf16.mxu0 %vm262_vm4, %v1397_v18  ;;  %1160 = vmatprep.mubr.msk.bf16.mxu1 %vm377_vm5, %v1239_v34 }
  0x81   :  { %v450_v39 = vpop.permute.xlu1 %449 }
  0xc8   :  { %v1134_v40 = vpop.f32.mrf.mxu1 }
  0xca   :  { %v211_v41 = vpop.f32.mrf.mxu1 }
  0xcc   :  { %v1135_v42 = vpop.f32.mrf.mxu1 }
  0xce   :  { %v214_v43 = vpop.f32.mrf.mxu1 }
  0xd0   :  { %v1128_v25 = vpop.f32.mrf.mxu0  ;;  %v1138_v45 = vpop.f32.mrf.mxu1 }
  0xd2   :  { %v141_v26 = vpop.f32.mrf.mxu0  ;;  %v227_v48 = vpop.f32.mrf.mxu1 }
  0xd4   :  { %v1129_v27 = vpop.f32.mrf.mxu0  ;;  %v1139_v52 = vpop.f32.mrf.mxu1 }
  0xd5   :  { %v157_v28 = vpack.c.bf16 %v1129_v27, %v1128_v25  ;;  %v469_v27 = vld [vmem:[%s1619_s10] sm:$0xff] }
  0xd6   :  { %v144_v29 = vpop.f32.mrf.mxu0  ;;  %v230_v61 = vpop.f32.mrf.mxu1 }
  0xd7   :  { %v156_v30 = vpack.c.bf16 %v144_v29, %v141_v26  ;;  %1140 = vmatprep.subr.bf16.mxu0 %v157_v28  ;;  %v470_v29 = vpack.c.bf16 %v469_v27, %v469_v27  ;;  %v690_v27 = vld [vmem:[%s1623_s13 + $0x10] sm:$0xff] }
  0xd8   :  { %1141 = vmatpush3.bf16.msra.mxu0 %v157_v28 }
  0xd9   :  { %1142 = vmatprep.subr.bf16.mxu0 %v156_v30  ;;  %v472_v34 = vsel %vm103_vm0, %v470_v29, 0 }
  0xdc   :  { %1143 = vmatpush3.bf16.msra.mxu0 %v156_v30  ;;  %v1240_v30 = vld [vmem:[%s1616_s4 + $0x8] sm:$0xff]  }
  0xdf   :  { %1145 = vmatmul.mubr.msk.bf16.vlgmr.msra.gmra.mxu0 %vm262_vm4, %v1424_v31 }
  0xe0   :  { %1148 = vmatprep.mubr.msk.bf16.mxu0 %vm262_vm4, %v1429_v32 }
  0xe7   :  { %1149 = vmatmul.mubr.msk.bf16.gmra.mxu0 %vm262_vm4, %v1438_v33 }
 0x19f   :  { %v1146_v44 = vpop.f32.mrf.mxu0 }
 0x1a0   :  { %v318_v60 = vadd.f32 %v1146_v44, %v1134_v40  ;;  %v440_v40 = vpop.permute.xlu0 %439 }
 0x1a1   :  { %v309_v46 = vpop.f32.mrf.mxu0 }
 0x1a2   :  { %v349_v9 = vadd.f32 %v1041_v55, %v318_v60  ;;  %v310_v10 = vadd.f32 %v309_v46, %v211_v41 }
 0x1a3   :  { %v1147_v47 = vpop.f32.mrf.mxu0 }
 0x1a4   :  { %v321_v56 = vadd.f32 %v1147_v47, %v1135_v42  ;;  %v357_v20 = vmax.f32 %v349_v9, 0.0  ;;  %v347_v21 = vadd.f32 %v1041_v55, %v310_v10 }
 0x1a5   :  { %v312_v49 = vpop.f32.mrf.mxu0 }
 0x1a6   :  { %v350_v2 = vadd.f32 %v1041_v55, %v321_v56  ;;  %v313_v3 = vadd.f32 %v312_v49, %v214_v43  ;;  %v355_v26 = vmax.f32 %v347_v21, 0.0  ;;  %v455_v43 = vpop.permute.xlu1 %454 }
 0x1a7   :  { %v1150_v50 = vpop.f32.mrf.mxu0 }
 0x1a8   :  { %v334_v51 = vadd.f32 %v1150_v50, %v1138_v45  ;;  %v358_v15 = vmax.f32 %v350_v2, 0.0  ;;  %v348_v16 = vadd.f32 %v1041_v55, %v313_v3  ;;  %v445_v45 = vpop.permute.xlu0 %444 }
 0x1a9   :  { %v325_v53 = vpop.f32.mrf.mxu0 }
 0x1aa   :  { %v326_v54 = vadd.f32 %v325_v53, %v227_v48  ;;  %v353_v58 = vadd.f32 %v1041_v55, %v334_v51  ;;  %v356_v23 = vmax.f32 %v348_v16, 0.0  ;;  %v364_v25 = vpack.c.bf16 %v358_v15, %v357_v20 }
 0x1ab   :  { %v1151_v57 = vpop.f32.mrf.mxu0 }
 0x1ac   :  { %v337_v59 = vadd.f32 %v1151_v57, %v1139_v52  ;;  %v351_v63 = vadd.f32 %v1041_v55, %v326_v54  ;;  %v361_v5 = vmax.f32 %v353_v58, 0.0  ;;  %v363_v28 = vpack.c.bf16 %v356_v23, %v355_v26  ;;  %v1050_v58 = vld [vmem:[%s1621_s11] ss:$0 sm:$0xff]  ;;  %v630_v26 = vld [vmem:[%s1622_s12 + $0x18] sm:$0xff] }
 0x1ad   :  { %v328_v62 = vpop.f32.mrf.mxu0 }
 0x1ae   :  { %v354_v0 = vadd.f32 %v1041_v55, %v337_v59  ;;  %v329_v1 = vadd.f32 %v328_v62, %v230_v61  ;;  %v359_v11 = vmax.f32 %v351_v63, 0.0 }
 0x1b0   :  { %v362_v6 = vmax.f32 %v354_v0, 0.0  ;;  %v352_v7 = vadd.f32 %v1041_v55, %v329_v1 }
 0x1b2   :  { %v360_v12 = vmax.f32 %v352_v7, 0.0  ;;  %v366_v13 = vpack.c.bf16 %v362_v6, %v361_v5 }
 0x1b4   :  { %1152 = vmatprep.subr.bf16.mxu1 %v366_v13  ;;  %v365_v19 = vpack.c.bf16 %v360_v12, %v359_v11 }
 0x1b5   :  { %1153 = vmatpush3.bf16.msra.mxu1 %v366_v13 }
 0x1b6   :  { %1154 = vmatprep.subr.bf16.mxu1 %v365_v19 }
 0x1b9   :  { %1155 = vmatpush3.bf16.msra.mxu1 %v365_v19 }
 0x1ba   :  { %1156 = vmatprep.subr.bf16.mxu1 %v364_v25 }
 0x1bd   :  { %1157 = vmatpush3.bf16.msra.mxu1 %v364_v25  ;;  %v629_v25 = vld [vmem:[%s1622_s12 + $0x10] sm:$0xff] }
 0x1be   :  { %1158 = vmatprep.subr.bf16.mxu1 %v363_v28 }
 0x1c1   :  { %1159 = vmatpush3.bf16.msra.mxu1 %v363_v28  ;;  %v632_v28 = vpack.c.bf16 %v630_v26, %v629_v25 }
 0x1c2   :  { %1230 = vmatprep.subr.msk.bf16.mxu1 %vm103_vm0, %v470_v29  ;;  %v691_v29 = vld [vmem:[%s1623_s13 + $0x18] sm:$0xff] }
 0x1c3   :  { %1178 = vmatprep.subr.bf16.mxu0 %v632_v28 }
 0x1c4   :  { %1161 = vmatmul.mubr.msk.bf16.vlgmr.msra.gmra.mxu1 %vm377_vm5, %v1240_v30  ;;  %v693_v30 = vpack.c.bf16 %v691_v29, %v690_v27  ;;  %1179 = vmatpush3.bf16.msra.mxu0 %v632_v28 }
 0x1c5   :  { %1165 = vmatpush3.bf16.msra.mxu1 %v472_v34  ;;  %1166 = vmatprep.mubr.msk.bf16.mxu1 %vm96_vm1, %v1353_v4  ;;  %v464_v4 = vld [vmem:[%s1620_s9 + $0x8] sm:$0xff]  ;;  %v627_v34 = vld [vmem:[%s1622_s12] sm:$0xff] }
 0x1c6   :  { %1170 = vmatprep.subr.bf16.mxu1 %v468_v37 }
 0x1cc   :  { %1167 = vmatmul.mubr.msk.bf16.vlgmr.msra.gmra.mxu1 %vm96_vm1, %v1365_v8  ;;  %v467_v8 = vpack.c.bf16 %v464_v4, %v463_v38  ;;  %v689_v38 = vld [vmem:[%s1623_s13 + $0x8] sm:$0xff] }
 0x1cd   :  { %1171 = vmatpush3.bf16.msra.mxu1 %v468_v37  ;;  %v631_v37 = vpack.c.bf16 %v628_v35, %v627_v34  ;;  %v692_v4 = vpack.c.bf16 %v689_v38, %v688_v36 }
 0x1ce   :  { %1172 = vmatprep.subr.bf16.mxu1 %v467_v8 }
 0x1cf   :  { %1180 = vmatprep.subr.bf16.mxu0 %v631_v37 }
 0x1d0   :  { %1181 = vmatpush3.bf16.msra.mxu0 %v631_v37 }
 0x1d1   :  { %1173 = vmatpush3.bf16.msra.mxu1 %v467_v8 }
 0x1d2   :  { %1186 = vmatprep.subr.bf16.mxu1 %v693_v30 }
 0x284   :  { %v1162_v41 = vpop.f32.mrf.mxu1 }
 0x285   :  { %v459_v50 = vmul.f32 %v1162_v41, %v450_v39 }
 0x286   :  { %v418_v42 = vpop.f32.mrf.mxu1 }
 0x287   :  { %v457_v48 = vmul.f32 %v440_v40, %v418_v42 }
 0x288   :  { %v1163_v44 = vpop.f32.mrf.mxu1 }
 0x289   :  { %v460_v46 = vmul.f32 %v1163_v44, %v455_v43 }
 0x28a   :  { %v421_v47 = vpop.f32.mrf.mxu1 }
 0x28b   :  { %v458_v49 = vmul.f32 %v445_v45, %v421_v47  ;;  %v462_v52 = vpack.c.bf16 %v460_v46, %v459_v50 }
 0x28c   :  { %v1168_v53 = vpop.f32.mrf.mxu1 }
 0x28d   :  { %v461_v51 = vpack.c.bf16 %v458_v49, %v457_v48 }
 0x28e   :  { %v508_v54 = vpop.f32.mrf.mxu1 }
 0x28f   :  { %1174 = vmatprep.mubr.msk.bf16.mxu1 %vm262_vm4, %v461_v51 }
 0x290   :  { %1175 = vmatmul.mubr.msk.bf16.vlgmr.msra.gmra.mxu1 %vm262_vm4, %v462_v52  ;;  %v1169_v55 = vpop.f32.mrf.mxu1 }
 0x291   :  { %1187 = vmatpush3.bf16.msra.mxu1 %v693_v30 }
 0x292   :  { %v511_v56 = vpop.f32.mrf.mxu1  ;;  %1188 = vmatprep.subr.bf16.mxu1 %v692_v4 }
 0x295   :  { %1189 = vmatpush3.bf16.msra.mxu1 %v692_v4 }
 0x350   :  { %v1176_v57 = vpop.f32.mrf.mxu1 }
 0x351   :  { %v572_v59 = vadd.f32 %v1176_v57, %v1168_v53 }
 0x352   :  { %v563_v60 = vpop.f32.mrf.mxu1 }
 0x353   :  { %v587_v61 = vadd.f32 %v1050_v58, %v572_v59  ;;  %v564_v62 = vadd.f32 %v563_v60, %v508_v54 }
 0x354   :  { %v1177_v63 = vpop.f32.mrf.mxu1 }
 0x355   :  { %v585_v0 = vadd.f32 %v1050_v58, %v564_v62  ;;  %v575_v1 = vadd.f32 %v1177_v63, %v1169_v55  ;;  %v591_v3 = vmax.f32 %v587_v61, 0.0 }
 0x356   :  { %v566_v2 = vpop.f32.mrf.mxu1 }
 0x357   :  { %v589_v5 = vmax.f32 %v585_v0, 0.0  ;;  %v588_v6 = vadd.f32 %v1050_v58, %v575_v1  ;;  %v567_v7 = vadd.f32 %v566_v2, %v511_v56  ;;  %v595_v15 = vmul.f32 %v591_v3, %v591_v3  ;;  %v1241_v56 = vld [vmem:[%s1625_s3] sm:$0xff]  }
 0x359   :  { %v586_v9 = vadd.f32 %v1050_v58, %v567_v7  ;;  %v593_v10 = vmul.f32 %v589_v5, %v589_v5  ;;  %v592_v11 = vmax.f32 %v588_v6, 0.0  ;;  %v603_v20 = vsel %vm262_vm4, %v595_v15, 0.0  ;;  %v1242_v7 = vld [vmem:[%s1625_s3 + $0x8] sm:$0xff]  }
 0x35b   :  { %v590_v12 = vmax.f32 %v586_v9, 0.0  ;;  %v597_v13 = vsel %vm262_vm4, %v593_v10, 0.0  ;;  %v596_v21 = vmul.f32 %v592_v11, %v592_v11  ;;  %v1243_v9 = vld [vmem:[%s1625_s3 + $0x10] sm:$0xff]  }
 0x35c   :  { %598 = vadd.xlane.f32.xlu0 %v597_v13 }
 0x35d   :  { %v594_v16 = vmul.f32 %v590_v12, %v590_v12  ;;  %v606_v23 = vsel %vm262_vm4, %v596_v21, 0.0 }
 0x35f   :  { %v600_v19 = vsel %vm262_vm4, %v594_v16, 0.0 }
 0x360   :  { %601 = vadd.xlane.f32.xlu1 %v600_v19  ;;  %604 = vadd.xlane.f32.xlu0 %v603_v20 }
 0x364   :  { %607 = vadd.xlane.f32.xlu0 %v606_v23 }
 0x3e5   :  { %v599_v8 = vpop.xlane.xlu0 %598 }
 0x3e6   :  { %v609_v39 = vmax.f32 %v599_v8, 1e-24 }
 0x3e8   :  { %1245 = vrsqrt.f32 %v609_v39 }
 0x3e9   :  { %v602_v40 = vpop.xlane.xlu1 %601  ;;  %v605_v41 = vpop.xlane.xlu0 %604 }
 0x3ea   :  { %v610_v42 = vmax.f32 %v602_v40, 1e-24  ;;  %v611_v43 = vmax.f32 %v605_v41, 1e-24 }
 0x3ec   :  { %1247 = vrsqrt.f32 %v610_v42 }
 0x3ed   :  { %1249 = vrsqrt.f32 %v611_v43  ;;  %v608_v44 = vpop.xlane.xlu0 %607 }
 0x3ee   :  { %v612_v45 = vmax.f32 %v608_v44, 1e-24 }
 0x3f0   :  { %1251 = vrsqrt.f32 %v612_v45 }
 0x3f5   :  { %v1246_v46 = vpop.eup %1245 }
 0x3f6   :  { %v617_v47 = vmul.f32 %v1246_v46, %v589_v5 }
 0x3f8   :  { %621 = vst.msk [vmem:[%s1624_s16] sm:$0xff] %vm262_vm4, %v617_v47 }
 0x3f9   :  { %v1248_v48 = vpop.eup %1247 }
 0x3fa   :  { %v1250_v49 = vpop.eup %1249  ;;  %v618_v50 = vmul.f32 %v1248_v48, %v590_v12 }
 0x3fb   :  { %v619_v51 = vmul.f32 %v1250_v49, %v591_v3 }
 0x3fc   :  { %622 = vst.msk [vmem:[%s1624_s16 + $0x8] sm:$0xff] %vm262_vm4, %v618_v50  ;;  %v625_v52 = vpack.c.bf16 %v618_v50, %v617_v47 }
 0x3fd   :  { %v1252_v53 = vpop.eup %1251  ;;  %623 = vst.msk [vmem:[%s1624_s16 + $0x10] sm:$0xff] %vm262_vm4, %v619_v51 }
 0x3fe   :  { %v620_v54 = vmul.f32 %v1252_v53, %v592_v11  ;;  %1182 = vmatprep.mubr.msk.bf16.mxu0 %vm262_vm4, %v625_v52  ;;  %1190 = vmatprep.mubr.msk.bf16.mxu1 %vm262_vm4, %v625_v52  ;;  %v1244_v11 = vld [vmem:[%s1625_s3 + $0x18] sm:$0xff]  }
 0x400   :  { %v626_v55 = vpack.c.bf16 %v620_v54, %v619_v51  ;;  %624 = vst.msk [vmem:[%s1624_s16 + $0x18] sm:$0xff] %vm262_vm4, %v620_v54 }
 0x402   :  { %1183 = vmatmul.mubr.msk.bf16.vlgmr.msra.gmra.mxu0 %vm262_vm4, %v626_v55  ;;  %1191 = vmatmul.mubr.msk.bf16.vlgmr.msra.gmra.mxu1 %vm262_vm4, %v626_v55 }
 0x403   :  { %1210 = vmatprep.mubr.msk.bf16.mxu1 %vm262_vm4, %v1397_v18  ;;  %1198 = vmatprep.mubr.msk.bf16.mxu0 %vm262_vm4, %v1241_v56  ;;  %v909_v18 = vld [vmem:[%s1626_s14] sm:$0xf] }
 0x404   :  { %v910_v6 = vpack.c.bf16 %v909_v18, %v909_v18 }
 0x406   :  { %v912_v10 = vsel %vm173_vm2, %v910_v6, 0 }
 0x4c2   :  { %v1184_v57 = vpop.f32.mrf.mxu0  ;;  %v1192_v58 = vpop.f32.mrf.mxu1 }
 0x4c4   :  { %v673_v59 = vpop.f32.mrf.mxu0  ;;  %v728_v60 = vpop.f32.mrf.mxu1 }
 0x4c6   :  { %v1185_v61 = vpop.f32.mrf.mxu0  ;;  %v1193_v62 = vpop.f32.mrf.mxu1 }
 0x4c7   :  { %v744_v63 = vpack.c.bf16 %v1185_v61, %v1184_v57  ;;  %v746_v0 = vpack.c.bf16 %v1193_v62, %v1192_v58 }
 0x4c8   :  { %v676_v1 = vpop.f32.mrf.mxu0  ;;  %v731_v2 = vpop.f32.mrf.mxu1 }
 0x4c9   :  { %v743_v3 = vpack.c.bf16 %v676_v1, %v673_v59  ;;  %v745_v5 = vpack.c.bf16 %v731_v2, %v728_v60  ;;  %1194 = vmatprep.subr.bf16.mxu0 %v746_v0  ;;  %1206 = vmatprep.subr.bf16.mxu1 %v744_v63 }
 0x4ca   :  { %1195 = vmatpush3.bf16.msra.mxu0 %v746_v0  ;;  %1207 = vmatpush3.bf16.msra.mxu1 %v744_v63 }
 0x4cb   :  { %1196 = vmatprep.subr.bf16.mxu0 %v745_v5  ;;  %1208 = vmatprep.subr.bf16.mxu1 %v743_v3 }
 0x4ce   :  { %1197 = vmatpush3.bf16.msra.mxu0 %v745_v5  ;;  %1209 = vmatpush3.bf16.msra.mxu1 %v743_v3 }
 0x4cf   :  { %1231 = vmatprep.subr.msk.bf16.mxu0 %vm173_vm2, %v910_v6 }
 0x4d1   :  { %1199 = vmatmul.mubr.msk.bf16.vlgmr.msra.gmra.mxu0 %vm262_vm4, %v1242_v7  ;;  %1211 = vmatmul.mubr.msk.bf16.vlgmr.msra.gmra.mxu1 %vm262_vm4, %v1424_v31 }
 0x4d2   :  { %1219 = vmatpush3.bf16.msra.mxu0 %v912_v10  ;;  %1202 = vmatprep.mubr.msk.bf16.mxu0 %vm262_vm4, %v1243_v9 }
 0x4d3   :  { %1214 = vmatprep.mubr.msk.bf16.mxu1 %vm262_vm4, %v1429_v32 }
 0x4d9   :  { %1203 = vmatmul.mubr.msk.bf16.gmra.mxu0 %vm262_vm4, %v1244_v11  ;;  %1215 = vmatmul.mubr.msk.bf16.gmra.mxu1 %vm262_vm4, %v1438_v33 }
 0x4da   :  { %1220 = vmatprep.mubr.msk.bf16.mxu0 %vm160_vm3, %v1380_v14 }
 0x4e1   :  { %1221 = vmatmul.mubr.msk.bf16.vlgmr.msra.gmra.mxu0 %vm160_vm3, %v1388_v17 }
 0x4e2   :  { %1224 = vmatprep.mubr.msk.bf16.mxu0 %vm160_vm3, %v1410_v22  ;;  %v1071_v22 = vld [vmem:[%s1627_s15] ss:$0 sm:$0xff] }
 0x4e9   :  { %1225 = vmatmul.mubr.msk.bf16.gmra.mxu0 %vm160_vm3, %v1415_v24 }
 0x591   :  { %v1200_v31 = vpop.f32.mrf.mxu0  ;;  %v1212_v32 = vpop.f32.mrf.mxu1 }
 0x592   :  { %v887_v17 = vadd.f32 %v1212_v32, %v1200_v31 }
 0x593   :  { %v813_v12 = vpop.f32.mrf.mxu0  ;;  %v878_v13 = vpop.f32.mrf.mxu1 }
 0x594   :  { %v879_v24 = vadd.f32 %v878_v13, %v813_v12 }
 0x595   :  { %v1201_v15 = vpop.f32.mrf.mxu0  ;;  %v1213_v16 = vpop.f32.mrf.mxu1 }
 0x596   :  { %v890_v30 = vadd.f32 %v1213_v16, %v1201_v15 }
 0x597   :  { %v816_v19 = vpop.f32.mrf.mxu0  ;;  %v881_v20 = vpop.f32.mrf.mxu1 }
 0x598   :  { %v882_v37 = vadd.f32 %v881_v20, %v816_v19 }
 0x599   :  { %v1204_v33 = vpop.f32.mrf.mxu0  ;;  %v1216_v23 = vpop.f32.mrf.mxu1 }
 0x59a   :  { %v903_v41 = vadd.f32 %v1216_v23, %v1204_v33 }
 0x59b   :  { %v829_v21 = vpop.f32.mrf.mxu0  ;;  %v894_v28 = vpop.f32.mrf.mxu1 }
 0x59c   :  { %v895_v46 = vadd.f32 %v894_v28, %v829_v21 }
 0x59d   :  { %v1205_v14 = vpop.f32.mrf.mxu0  ;;  %v1217_v39 = vpop.f32.mrf.mxu1 }
 0x59e   :  { %v906_v52 = vadd.f32 %v1217_v39, %v1205_v14 }
 0x59f   :  { %v832_v25 = vpop.f32.mrf.mxu0  ;;  %v897_v50 = vpop.f32.mrf.mxu1 }
 0x5a0   :  { %v898_v57 = vadd.f32 %v897_v50, %v832_v25 }
 0x5a1   :  { %v1222_v26 = vpop.f32.mrf.mxu0 }
 0x5a2   :  { %v981_v27 = vadd.f32 %v1222_v26, %v887_v17 }
 0x5a3   :  { %v948_v29 = vpop.f32.mrf.mxu0 }
 0x5a4   :  { %v996_v34 = vadd.f32 %v1071_v22, %v981_v27  ;;  %v979_v35 = vadd.f32 %v948_v29, %v879_v24 }
 0x5a5   :  { %v1223_v36 = vpop.f32.mrf.mxu0 }
 0x5a6   :  { %v1004_v38 = vmax.f32 %v996_v34, 0.0  ;;  %v994_v4 = vadd.f32 %v1071_v22, %v979_v35  ;;  %v982_v8 = vadd.f32 %v1223_v36, %v890_v30 }
 0x5a7   :  { %v951_v40 = vpop.f32.mrf.mxu0 }
 0x5a8   :  { %1013 = vst.msk [vmem:[%s1628_s17 + $0x10] sm:$0xff] %vm1010_vm6, %v1004_v38  ;;  %v1002_v42 = vmax.f32 %v994_v4, 0.0  ;;  %v997_v43 = vadd.f32 %v1071_v22, %v982_v8  ;;  %v980_v44 = vadd.f32 %v951_v40, %v882_v37 }
 0x5a9   :  { %v1226_v45 = vpop.f32.mrf.mxu0 }
 0x5aa   :  { %1011 = vst.msk [vmem:[%s1628_s17] sm:$0xff] %vm1010_vm6, %v1002_v42  ;;  %v1005_v47 = vmax.f32 %v997_v43, 0.0  ;;  %v995_v48 = vadd.f32 %v1071_v22, %v980_v44  ;;  %v985_v49 = vadd.f32 %v1226_v45, %v903_v41 }
 0x5ab   :  { %v964_v51 = vpop.f32.mrf.mxu0 }
 0x5ac   :  { %1014 = vst.msk [vmem:[%s1628_s17 + $0x18] sm:$0xff] %vm1010_vm6, %v1005_v47  ;;  %v1003_v53 = vmax.f32 %v995_v48, 0.0  ;;  %v1000_v54 = vadd.f32 %v1071_v22, %v985_v49  ;;  %v983_v55 = vadd.f32 %v964_v51, %v895_v46 }
 0x5ad   :  { %v1227_v56 = vpop.f32.mrf.mxu0 }
 0x5ae   :  { %1012 = vst.msk [vmem:[%s1628_s17 + $0x8] sm:$0xff] %vm1010_vm6, %v1003_v53  ;;  %v1008_v58 = vmax.f32 %v1000_v54, 0.0  ;;  %v998_v59 = vadd.f32 %v1071_v22, %v983_v55  ;;  %v986_v60 = vadd.f32 %v1227_v56, %v906_v52 }
 0x5af   :  { %v967_v61 = vpop.f32.mrf.mxu0 }
 0x5b0   :  { %1017 = vst.msk [vmem:[%s1628_s17 + $0x30] sm:$0xff] %vm1010_vm6, %v1008_v58  ;;  %v1006_v62 = vmax.f32 %v998_v59, 0.0  ;;  %v1001_v63 = vadd.f32 %v1071_v22, %v986_v60  ;;  %v984_v0 = vadd.f32 %v967_v61, %v898_v57 }
 0x5b2   :  { %1015 = vst.msk [vmem:[%s1628_s17 + $0x20] sm:$0xff] %vm1010_vm6, %v1006_v62  ;;  %v1009_v1 = vmax.f32 %v1001_v63, 0.0  ;;  %v999_v2 = vadd.f32 %v1071_v22, %v984_v0 }
 0x5b4   :  { %1018 = vst.msk [vmem:[%s1628_s17 + $0x38] sm:$0xff] %vm1010_vm6, %v1009_v1  ;;  %v1007_v18 = vmax.f32 %v999_v2, 0.0 }
 0x5b6   :  { %1016 = vst.msk [vmem:[%s1628_s17 + $0x28] sm:$0xff] %vm1010_vm6, %v1007_v18 }

// kernel: egsage_stack_forward.4
= control target key start
LH: loop header
LB: loop body
LE: loop exit
PB: predicated region body
PF: predicated region fallthrough
CT: control target
= control target key end

     0   :  { %s1639_s0 = inlined_call_operand.vmem [shape: f32[32,32], index: 0, kind: input, shape index: {}]   ;;  %s1640_s1 = inlined_call_operand.vmem [shape: f32[64,16], index: 1, kind: input, shape index: {}]   ;;  %s1641_s2 = inlined_call_operand.vmem [shape: bf16[64,32], index: 2, kind: input, shape index: {}]   ;;  %s1642_s3 = inlined_call_operand.vmem [shape: bf16[64,32], index: 3, kind: input, shape index: {}]   ;;  %s1643_s4 = inlined_call_operand.vmem [shape: bf16[32,64], index: 4, kind: input, shape index: {}]   ;;  %s1644_s5 = inlined_call_operand.vmem [shape: f32[32,1], index: 5, kind: input, shape index: {}]   ;;  %s1645_s6 = inlined_call_operand.vmem [shape: f32[32,32], index: 6, kind: input, shape index: {}]   ;;  %s1646_s7 = inlined_call_operand.vmem [shape: f32[16,32], index: 7, kind: input, shape index: {}]   ;;  %s1647_s8 = inlined_call_operand.vmem [shape: f32[1,32], index: 8, kind: input, shape index: {}]   ;;  %s1648_s9 = inlined_call_operand.vmem [shape: f32[32,32], index: 9, kind: input, shape index: {}]   ;;  %s1649_s10 = inlined_call_operand.vmem [shape: f32[32,32], index: 10, kind: input, shape index: {}]   ;;  %s1650_s11 = inlined_call_operand.vmem [shape: f32[1,32], index: 11, kind: input, shape index: {}]   ;;  %s1651_s12 = inlined_call_operand.vmem [shape: f32[32,16], index: 12, kind: input, shape index: {}]   ;;  %s1652_s13 = inlined_call_operand.vmem [shape: f32[32,16], index: 13, kind: input, shape index: {}]   ;;  %s1653_s14 = inlined_call_operand.vmem [shape: f32[16,16], index: 14, kind: input, shape index: {}]   ;;  %s1654_s15 = inlined_call_operand.vmem [shape: f32[1,16], index: 15, kind: input, shape index: {}]   ;;  %s1655_s16 = inlined_call_operand.vmem [shape: f32[32,32], index: 16, kind: output, shape index: {0}]   ;;  %s1656_s17 = inlined_call_operand.hbm [shape: f32[64,16], index: 17, kind: output, shape index: {1}]  }
   0x1   :  { %1659 = sst [smem:[#allocation5_spill]] %s1639_s0 }
   0x2   :  { %1660 = sst [smem:[#allocation6_spill]] %s1640_s1 }
   0x3   :  { %v97_v0 = vld [vmem:[%s1645_s6 + $0x10] sm:$0xff]  ;;  %v98_v1 = vld [vmem:[%s1645_s6 + $0x18] sm:$0xff]  ;;  %v95_v2 = vld [vmem:[%s1645_s6] sm:$0xff]  ;;  %s1661_s1 = sld [smem:[#allocation5_spill]]  ;;  %vm101_vm0 = vcmask 261120  }
   0x4   :  { %v100_v3 = vpack.c.bf16 %v98_v1, %v97_v0  ;;  %v96_v4 = vld [vmem:[%s1645_s6 + $0x8] sm:$0xff] }
   0x5   :  { %v99_v7 = vpack.c.bf16 %v96_v4, %v95_v2 }
   0x6   :  { %1133 = vmatprep.subr.bf16.mxu0 %v100_v3 }
   0x7   :  { %1134 = vmatpush3.bf16.msra.mxu0 %v100_v3 }
   0x8   :  { %1135 = vmatprep.subr.bf16.mxu0 %v99_v7 }
   0x9   :  { %v57_v5 = vld [vmem:[%s1661_s1] sm:$0xff]  ;;  %v58_v6 = vld [vmem:[%s1661_s1 + $0x8] sm:$0xff]  ;;  %v59_v9 = vld [vmem:[%s1661_s1 + $0x10] sm:$0xff] }
   0xa   :  { %v61_v8 = vpack.c.bf16 %v58_v6, %v57_v5  ;;  %v60_v10 = vld [vmem:[%s1661_s1 + $0x18] sm:$0xff] }
   0xb   :  { %v1406_v11 = vpack.c.bf16 %v60_v10, %v59_v9  ;;  %1136 = vmatpush3.bf16.msra.mxu0 %v99_v7 }
   0xc   :  { %1137 = vmatprep.mubr.msk.bf16.mxu0 %vm101_vm0, %v61_v8 }
   0xd   :  { %23 = vsyncpa [#allocation3], 0  ;;  %v159_v12 = vld [vmem:[%s1646_s7] sm:$0xff]  ;;  %v160_v13 = vld [vmem:[%s1646_s7 + $0x8] sm:$0xff]  ;;  %s1662_s30 = sld [smem:[#allocation6_spill]]  ;;  %vm162_vm1 = vcmask 130048  }
   0xe   :  { %1138 = vmatmul.mubr.msk.bf16.vlgmr.msra.gmra.mxu0 %vm101_vm0, %v1406_v11  ;;  %v161_v14 = vpack.c.bf16 %v160_v13, %v159_v12  ;;  %v1439_v21 = vld [vmem:[%s1641_s2] sm:$0xff]   ;;  %v1467_v34 = vld [vmem:[%s1641_s2 + $0x8] sm:$0xff]   ;;  %v1472_v35 = vld [vmem:[%s1641_s2 + $0x10] sm:$0xff]   ;;  %vm374_vm2 = vcmask 523264   ;;  %v1287_v40 = vmov 0  }
   0xf   :  { %1155 = vmatprep.mubr.msk.bf16.mxu0 %vm101_vm0, %v1439_v21  ;;  %v1481_v36 = vld [vmem:[%s1641_s2 + $0x18] sm:$0xff]   ;;  %v1251_v37 = vld [vmem:[%s1643_s4] sm:$0xff]   ;;  %v432_v39 = vld [vmem:[%s1644_s5 + $0x10] sm:$0xff]  ;;  %1245 = vset.pattern.permute.xlu0 %v1287_v40 }
  0x10   :  { %1141 = vmatprep.subr.bf16.mxu1 %v161_v14  ;;  %v430_v38 = vld [vmem:[%s1644_s5] sm:$0xff]  ;;  %1246 = vset.pattern.permute.xlu1 %v1287_v40  ;;  %v468_v41 = vld [vmem:[%s1649_s10 + $0x10] sm:$0xff]  ;;  %v469_v42 = vld [vmem:[%s1649_s10 + $0x18] sm:$0xff] }
  0x11   :  { %1142 = vmatpush3.bf16.msra.mxu1 %v161_v14  ;;  %436 = vperm.xlu0 %1245, %v430_v38   ;;  %v471_v43 = vpack.c.bf16 %v469_v42, %v468_v41  ;;  %v431_v44 = vld [vmem:[%s1644_s5 + $0x8] sm:$0xff]  ;;  %v433_v45 = vld [vmem:[%s1644_s5 + $0x18] sm:$0xff]  ;;  %v1048_v61 = vld [vmem:[%s1647_s8] ss:$0 sm:$0xff] }
  0x12   :  { %446 = vperm.xlu1 %1246, %v432_v39   ;;  %v467_v38 = vld [vmem:[%s1649_s10 + $0x8] sm:$0xff]  ;;  %v462_v40 = vld [vmem:[%s1648_s9 + $0x10] sm:$0xff]  ;;  %v463_v41 = vld [vmem:[%s1648_s9 + $0x18] sm:$0xff] }
  0x13   :  { %v63_v15 = vld [vmem:[%s1662_s30] sm:$0xff]  ;;  %v64_v16 = vld [vmem:[%s1662_s30 + $0x8] sm:$0xff]  ;;  %v65_v18 = vld [vmem:[%s1662_s30 + $0x10] sm:$0xff]  ;;  %1175 = vmatprep.subr.bf16.mxu1 %v471_v43  ;;  %v465_v42 = vpack.c.bf16 %v463_v41, %v462_v40 }
  0x14   :  { %v1422_v17 = vpack.c.bf16 %v64_v16, %v63_v15  ;;  %v66_v19 = vld [vmem:[%s1662_s30 + $0x18] sm:$0xff]  ;;  %v67_v22 = vld [vmem:[%s1662_s30 + $0x20] sm:$0xff]  ;;  %v68_v23 = vld [vmem:[%s1662_s30 + $0x28] sm:$0xff] }
  0x15   :  { %v1430_v20 = vpack.c.bf16 %v66_v19, %v65_v18  ;;  %v1449_v24 = vpack.c.bf16 %v68_v23, %v67_v22  ;;  %v69_v25 = vld [vmem:[%s1662_s30 + $0x30] sm:$0xff]  ;;  %v70_v26 = vld [vmem:[%s1662_s30 + $0x38] sm:$0xff]  ;;  %441 = vperm.xlu0 %1245, %v431_v44   ;;  %v461_v44 = vld [vmem:[%s1648_s9 + $0x8] sm:$0xff] }
  0x16   :  { %1143 = vmatprep.mubr.msk.bf16.mxu1 %vm162_vm1, %v1422_v17  ;;  %v1457_v27 = vpack.c.bf16 %v70_v26, %v69_v25  ;;  %451 = vperm.xlu1 %1246, %v433_v45  }
  0x17   :  { %1144 = vmatmul.mubr.msk.bf16.vlgmr.msra.gmra.mxu1 %vm162_vm1, %v1430_v20 }
  0x18   :  { %1147 = vmatprep.mubr.msk.bf16.mxu1 %vm162_vm1, %v1449_v24  ;;  %1176 = vmatpush3.bf16.msra.mxu1 %v471_v43  ;;  %v460_v43 = vld [vmem:[%s1648_s9] sm:$0xff] }
  0x19   :  { %v464_v45 = vpack.c.bf16 %v461_v44, %v460_v43  ;;  %v687_v43 = vld [vmem:[%s1652_s13 + $0x8] sm:$0xff] }
  0x1f   :  { %1148 = vmatmul.mubr.msk.bf16.gmra.mxu1 %vm162_vm1, %v1457_v27 }
  0x20   :  { %1179 = vmatprep.mubr.msk.bf16.mxu1 %vm101_vm0, %v61_v8 }
  0xce   :  { %v1139_v28 = vpop.f32.mrf.mxu0 }
  0xd0   :  { %v142_v29 = vpop.f32.mrf.mxu0 }
  0xd2   :  { %v1140_v30 = vpop.f32.mrf.mxu0 }
  0xd3   :  { %v158_v31 = vpack.c.bf16 %v1140_v30, %v1139_v28 }
  0xd4   :  { %v145_v32 = vpop.f32.mrf.mxu0 }
  0xd5   :  { %v157_v33 = vpack.c.bf16 %v145_v32, %v142_v29  ;;  %1151 = vmatprep.subr.bf16.mxu0 %v158_v31 }
  0xd6   :  { %1152 = vmatpush3.bf16.msra.mxu0 %v158_v31 }
  0xd7   :  { %1153 = vmatprep.subr.bf16.mxu0 %v157_v33  ;;  %v1145_v46 = vpop.f32.mrf.mxu1 }
  0xd9   :  { %v209_v47 = vpop.f32.mrf.mxu1 }
  0xda   :  { %1154 = vmatpush3.bf16.msra.mxu0 %v157_v33  ;;  %v1252_v33 = vld [vmem:[%s1643_s4 + $0x8] sm:$0xff]  }
  0xdb   :  { %v1146_v48 = vpop.f32.mrf.mxu1 }
  0xdd   :  { %1156 = vmatmul.mubr.msk.bf16.vlgmr.msra.gmra.mxu0 %vm101_vm0, %v1467_v34  ;;  %v212_v49 = vpop.f32.mrf.mxu1 }
  0xde   :  { %1159 = vmatprep.mubr.msk.bf16.mxu0 %vm101_vm0, %v1472_v35 }
  0xdf   :  { %v1149_v51 = vpop.f32.mrf.mxu1 }
  0xe1   :  { %v225_v54 = vpop.f32.mrf.mxu1 }
  0xe3   :  { %v1150_v58 = vpop.f32.mrf.mxu1 }
  0xe5   :  { %1160 = vmatmul.mubr.msk.bf16.gmra.mxu0 %vm101_vm0, %v1481_v36  ;;  %v228_v3 = vpop.f32.mrf.mxu1 }
  0xe6   :  { %1171 = vmatprep.mubr.msk.bf16.mxu0 %vm374_vm2, %v1251_v37  ;;  %v466_v37 = vld [vmem:[%s1649_s10] sm:$0xff] }
  0xe7   :  { %v470_v39 = vpack.c.bf16 %v467_v38, %v466_v37  ;;  %v689_v37 = vld [vmem:[%s1652_s13 + $0x18] sm:$0xff]  ;;  %v625_v38 = vld [vmem:[%s1651_s12] sm:$0xff] }
  0xe9   :  { %1177 = vmatprep.subr.bf16.mxu1 %v470_v39 }
  0xea   :  { %1178 = vmatpush3.bf16.msra.mxu1 %v470_v39  ;;  %v626_v39 = vld [vmem:[%s1651_s12 + $0x8] sm:$0xff] }
  0xeb   :  { %v629_v41 = vpack.c.bf16 %v626_v39, %v625_v38 }
  0xed   :  { %1180 = vmatmul.mubr.msk.bf16.vlgmr.msra.gmra.mxu1 %vm101_vm0, %v1406_v11 }
 0x19d   :  { %v1157_v50 = vpop.f32.mrf.mxu0 }
 0x19e   :  { %v315_v2 = vadd.f32 %v1157_v50, %v1145_v46  ;;  %v447_v46 = vpop.permute.xlu1 %446 }
 0x19f   :  { %v306_v52 = vpop.f32.mrf.mxu0 }
 0x1a0   :  { %v346_v14 = vadd.f32 %v1048_v61, %v315_v2  ;;  %v307_v15 = vadd.f32 %v306_v52, %v209_v47  ;;  %v437_v47 = vpop.permute.xlu0 %436 }
 0x1a1   :  { %v1158_v53 = vpop.f32.mrf.mxu0 }
 0x1a2   :  { %v318_v62 = vadd.f32 %v1158_v53, %v1146_v48  ;;  %v354_v26 = vmax.f32 %v346_v14, 0.0  ;;  %v344_v28 = vadd.f32 %v1048_v61, %v307_v15  ;;  %v452_v50 = vpop.permute.xlu1 %451 }
 0x1a3   :  { %v309_v55 = vpop.f32.mrf.mxu0 }
 0x1a4   :  { %v347_v8 = vadd.f32 %v1048_v61, %v318_v62  ;;  %v310_v9 = vadd.f32 %v309_v55, %v212_v49  ;;  %v352_v31 = vmax.f32 %v344_v28, 0.0  ;;  %v442_v52 = vpop.permute.xlu0 %441  ;;  %v1057_v62 = vld [vmem:[%s1650_s11] ss:$0 sm:$0xff] }
 0x1a5   :  { %v1161_v56 = vpop.f32.mrf.mxu0 }
 0x1a6   :  { %v331_v57 = vadd.f32 %v1161_v56, %v1149_v51  ;;  %v355_v22 = vmax.f32 %v347_v8, 0.0  ;;  %v345_v23 = vadd.f32 %v1048_v61, %v310_v9 }
 0x1a7   :  { %v322_v59 = vpop.f32.mrf.mxu0 }
 0x1a8   :  { %v323_v60 = vadd.f32 %v322_v59, %v225_v54  ;;  %v350_v0 = vadd.f32 %v1048_v61, %v331_v57  ;;  %v353_v29 = vmax.f32 %v345_v23, 0.0  ;;  %v361_v30 = vpack.c.bf16 %v355_v22, %v354_v26 }
 0x1a9   :  { %v1162_v63 = vpop.f32.mrf.mxu0 }
 0x1aa   :  { %v334_v1 = vadd.f32 %v1162_v63, %v1150_v58  ;;  %v348_v5 = vadd.f32 %v1048_v61, %v323_v60  ;;  %v358_v10 = vmax.f32 %v350_v0, 0.0  ;;  %v360_v32 = vpack.c.bf16 %v353_v29, %v352_v31  ;;  %v628_v31 = vld [vmem:[%s1651_s12 + $0x18] sm:$0xff] }
 0x1ab   :  { %v325_v4 = vpop.f32.mrf.mxu0 }
 0x1ac   :  { %v351_v6 = vadd.f32 %v1048_v61, %v334_v1  ;;  %v326_v7 = vadd.f32 %v325_v4, %v228_v3  ;;  %v356_v16 = vmax.f32 %v348_v5, 0.0 }
 0x1ad   :  { %v1181_v11 = vpop.f32.mrf.mxu1 }
 0x1ae   :  { %v359_v12 = vmax.f32 %v351_v6, 0.0  ;;  %v349_v13 = vadd.f32 %v1048_v61, %v326_v7 }
 0x1af   :  { %v506_v60 = vpop.f32.mrf.mxu1 }
 0x1b0   :  { %v357_v18 = vmax.f32 %v349_v13, 0.0  ;;  %v363_v19 = vpack.c.bf16 %v359_v12, %v358_v10 }
 0x1b1   :  { %v1182_v0 = vpop.f32.mrf.mxu1 }
 0x1b2   :  { %1163 = vmatprep.subr.bf16.mxu0 %v363_v19  ;;  %v362_v25 = vpack.c.bf16 %v357_v18, %v356_v16 }
 0x1b3   :  { %1164 = vmatpush3.bf16.msra.mxu0 %v363_v19  ;;  %v509_v7 = vpop.f32.mrf.mxu1 }
 0x1b4   :  { %1165 = vmatprep.subr.bf16.mxu0 %v362_v25 }
 0x1b7   :  { %1166 = vmatpush3.bf16.msra.mxu0 %v362_v25 }
 0x1b8   :  { %1167 = vmatprep.subr.bf16.mxu0 %v361_v30 }
 0x1bb   :  { %1168 = vmatpush3.bf16.msra.mxu0 %v361_v30  ;;  %v627_v30 = vld [vmem:[%s1651_s12 + $0x10] sm:$0xff] }
 0x1bc   :  { %1169 = vmatprep.subr.bf16.mxu0 %v360_v32 }
 0x1bf   :  { %1170 = vmatpush3.bf16.msra.mxu0 %v360_v32  ;;  %v688_v32 = vld [vmem:[%s1652_s13 + $0x10] sm:$0xff] }
 0x1c0   :  { %1183 = vmatprep.subr.bf16.mxu0 %v465_v42  ;;  %v691_v40 = vpack.c.bf16 %v689_v37, %v688_v32 }
 0x1c2   :  { %1172 = vmatmul.mubr.msk.bf16.vlgmr.msra.gmra.mxu0 %vm374_vm2, %v1252_v33  ;;  %v630_v33 = vpack.c.bf16 %v628_v31, %v627_v30 }
 0x1c3   :  { %1184 = vmatpush3.bf16.msra.mxu0 %v465_v42  ;;  %v686_v42 = vld [vmem:[%s1652_s13] sm:$0xff] }
 0x1c4   :  { %1185 = vmatprep.subr.bf16.mxu0 %v464_v45  ;;  %1191 = vmatprep.subr.bf16.mxu1 %v630_v33  ;;  %v690_v44 = vpack.c.bf16 %v687_v43, %v686_v42 }
 0x1c5   :  { %1192 = vmatpush3.bf16.msra.mxu1 %v630_v33 }
 0x1c6   :  { %1193 = vmatprep.subr.bf16.mxu1 %v629_v41 }
 0x1c7   :  { %1186 = vmatpush3.bf16.msra.mxu0 %v464_v45 }
 0x1c8   :  { %1199 = vmatprep.subr.bf16.mxu0 %v691_v40 }
 0x1c9   :  { %1194 = vmatpush3.bf16.msra.mxu1 %v629_v41 }
 0x282   :  { %v1173_v48 = vpop.f32.mrf.mxu0 }
 0x283   :  { %v456_v57 = vmul.f32 %v1173_v48, %v447_v46 }
 0x284   :  { %v415_v49 = vpop.f32.mrf.mxu0 }
 0x285   :  { %v454_v55 = vmul.f32 %v437_v47, %v415_v49 }
 0x286   :  { %v1174_v51 = vpop.f32.mrf.mxu0 }
 0x287   :  { %v457_v53 = vmul.f32 %v1174_v51, %v452_v50 }
 0x288   :  { %v418_v54 = vpop.f32.mrf.mxu0 }
 0x289   :  { %v455_v56 = vmul.f32 %v442_v52, %v418_v54  ;;  %v459_v59 = vpack.c.bf16 %v457_v53, %v456_v57 }
 0x28b   :  { %v458_v58 = vpack.c.bf16 %v455_v56, %v454_v55 }
 0x28d   :  { %1187 = vmatprep.mubr.msk.bf16.mxu0 %vm101_vm0, %v458_v58 }
 0x28e   :  { %1188 = vmatmul.mubr.msk.bf16.vlgmr.msra.gmra.mxu0 %vm101_vm0, %v459_v59 }
 0x28f   :  { %1200 = vmatpush3.bf16.msra.mxu0 %v691_v40 }
 0x290   :  { %1201 = vmatprep.subr.bf16.mxu0 %v690_v44 }
 0x293   :  { %1202 = vmatpush3.bf16.msra.mxu0 %v690_v44 }
 0x34e   :  { %v1189_v61 = vpop.f32.mrf.mxu0 }
 0x34f   :  { %v570_v63 = vadd.f32 %v1189_v61, %v1181_v11 }
 0x350   :  { %v561_v1 = vpop.f32.mrf.mxu0 }
 0x351   :  { %v585_v2 = vadd.f32 %v1057_v62, %v570_v63  ;;  %v562_v3 = vadd.f32 %v561_v1, %v506_v60 }
 0x352   :  { %v1190_v4 = vpop.f32.mrf.mxu0 }
 0x353   :  { %v583_v5 = vadd.f32 %v1057_v62, %v562_v3  ;;  %v573_v6 = vadd.f32 %v1190_v4, %v1182_v0  ;;  %v589_v9 = vmax.f32 %v585_v2, 0.0 }
 0x354   :  { %v564_v8 = vpop.f32.mrf.mxu0 }
 0x355   :  { %v587_v10 = vmax.f32 %v583_v5, 0.0  ;;  %v586_v12 = vadd.f32 %v1057_v62, %v573_v6  ;;  %v565_v13 = vadd.f32 %v564_v8, %v509_v7  ;;  %v593_v22 = vmul.f32 %v589_v9, %v589_v9 }
 0x357   :  { %v584_v14 = vadd.f32 %v1057_v62, %v565_v13  ;;  %v591_v15 = vmul.f32 %v587_v10, %v587_v10  ;;  %v590_v16 = vmax.f32 %v586_v12, 0.0  ;;  %v601_v26 = vsel %vm101_vm0, %v593_v22, 0.0  ;;  %v1253_v62 = vld [vmem:[%s1642_s3] sm:$0xff]  }
 0x359   :  { %v588_v18 = vmax.f32 %v584_v14, 0.0  ;;  %v595_v19 = vsel %vm101_vm0, %v591_v15, 0.0  ;;  %v594_v28 = vmul.f32 %v590_v16, %v590_v16  ;;  %v1254_v14 = vld [vmem:[%s1642_s3 + $0x8] sm:$0xff]   ;;  %v1255_v15 = vld [vmem:[%s1642_s3 + $0x10] sm:$0xff]  }
 0x35a   :  { %596 = vadd.xlane.f32.xlu0 %v595_v19 }
 0x35b   :  { %v592_v23 = vmul.f32 %v588_v18, %v588_v18  ;;  %v604_v29 = vsel %vm101_vm0, %v594_v28, 0.0 }
 0x35d   :  { %v598_v25 = vsel %vm101_vm0, %v592_v23, 0.0 }
 0x35e   :  { %599 = vadd.xlane.f32.xlu1 %v598_v25  ;;  %602 = vadd.xlane.f32.xlu0 %v601_v26 }
 0x362   :  { %605 = vadd.xlane.f32.xlu0 %v604_v29 }
 0x3e3   :  { %v597_v45 = vpop.xlane.xlu0 %596 }
 0x3e4   :  { %v607_v46 = vmax.f32 %v597_v45, 1e-24 }
 0x3e6   :  { %1257 = vrsqrt.f32 %v607_v46 }
 0x3e7   :  { %v600_v47 = vpop.xlane.xlu1 %599  ;;  %v603_v48 = vpop.xlane.xlu0 %602 }
 0x3e8   :  { %v608_v49 = vmax.f32 %v600_v47, 1e-24  ;;  %v609_v50 = vmax.f32 %v603_v48, 1e-24 }
 0x3ea   :  { %1259 = vrsqrt.f32 %v608_v49 }
 0x3eb   :  { %1261 = vrsqrt.f32 %v609_v50  ;;  %v606_v51 = vpop.xlane.xlu0 %605 }
 0x3ec   :  { %v610_v52 = vmax.f32 %v606_v51, 1e-24 }
 0x3ee   :  { %1263 = vrsqrt.f32 %v610_v52 }
 0x3f3   :  { %v1258_v53 = vpop.eup %1257 }
 0x3f4   :  { %v615_v54 = vmul.f32 %v1258_v53, %v587_v10 }
 0x3f6   :  { %619 = vst.msk [vmem:[%s1655_s16] sm:$0xff] %vm101_vm0, %v615_v54 }
 0x3f7   :  { %v1260_v55 = vpop.eup %1259 }
 0x3f8   :  { %v1262_v56 = vpop.eup %1261  ;;  %v616_v57 = vmul.f32 %v1260_v55, %v588_v18 }
 0x3f9   :  { %v617_v58 = vmul.f32 %v1262_v56, %v589_v9  ;;  %v908_v9 = vld [vmem:[%s1653_s14 + $0x8] sm:$0xff] }
 0x3fa   :  { %620 = vst.msk [vmem:[%s1655_s16 + $0x8] sm:$0xff] %vm101_vm0, %v616_v57  ;;  %v623_v59 = vpack.c.bf16 %v616_v57, %v615_v54 }
 0x3fb   :  { %v1264_v11 = vpop.eup %1263  ;;  %621 = vst.msk [vmem:[%s1655_s16 + $0x10] sm:$0xff] %vm101_vm0, %v617_v58 }
 0x3fc   :  { %1195 = vmatprep.mubr.msk.bf16.mxu1 %vm101_vm0, %v623_v59  ;;  %1203 = vmatprep.mubr.msk.bf16.mxu0 %vm101_vm0, %v623_v59  ;;  %v618_v60 = vmul.f32 %v1264_v11, %v590_v16  ;;  %v1256_v16 = vld [vmem:[%s1642_s3 + $0x18] sm:$0xff]  }
 0x3fe   :  { %622 = vst.msk [vmem:[%s1655_s16 + $0x18] sm:$0xff] %vm101_vm0, %v618_v60  ;;  %v624_v61 = vpack.c.bf16 %v618_v60, %v617_v58 }
 0x400   :  { %1196 = vmatmul.mubr.msk.bf16.vlgmr.msra.gmra.mxu1 %vm101_vm0, %v624_v61  ;;  %1204 = vmatmul.mubr.msk.bf16.vlgmr.msra.gmra.mxu0 %vm101_vm0, %v624_v61 }
 0x401   :  { %1223 = vmatprep.mubr.msk.bf16.mxu0 %vm101_vm0, %v1439_v21  ;;  %1211 = vmatprep.mubr.msk.bf16.mxu1 %vm101_vm0, %v1253_v62  ;;  %v907_v21 = vld [vmem:[%s1653_s14] sm:$0xff] }
 0x402   :  { %v909_v13 = vpack.c.bf16 %v908_v9, %v907_v21 }
 0x4c0   :  { %v1197_v63 = vpop.f32.mrf.mxu1  ;;  %v1205_v0 = vpop.f32.mrf.mxu0 }
 0x4c2   :  { %v671_v1 = vpop.f32.mrf.mxu1  ;;  %v726_v2 = vpop.f32.mrf.mxu0 }
 0x4c4   :  { %v1198_v3 = vpop.f32.mrf.mxu1  ;;  %v1206_v4 = vpop.f32.mrf.mxu0 }
 0x4c5   :  { %v742_v5 = vpack.c.bf16 %v1198_v3, %v1197_v63  ;;  %v744_v6 = vpack.c.bf16 %v1206_v4, %v1205_v0 }
 0x4c6   :  { %v674_v7 = vpop.f32.mrf.mxu1  ;;  %v729_v8 = vpop.f32.mrf.mxu0 }
 0x4c7   :  { %v741_v10 = vpack.c.bf16 %v674_v7, %v671_v1  ;;  %v743_v12 = vpack.c.bf16 %v729_v8, %v726_v2  ;;  %1207 = vmatprep.subr.bf16.mxu1 %v744_v6  ;;  %1219 = vmatprep.subr.bf16.mxu0 %v742_v5 }
 0x4c8   :  { %1208 = vmatpush3.bf16.msra.mxu1 %v744_v6  ;;  %1220 = vmatpush3.bf16.msra.mxu0 %v742_v5 }
 0x4c9   :  { %1209 = vmatprep.subr.bf16.mxu1 %v743_v12  ;;  %1221 = vmatprep.subr.bf16.mxu0 %v741_v10 }
 0x4cc   :  { %1210 = vmatpush3.bf16.msra.mxu1 %v743_v12  ;;  %1222 = vmatpush3.bf16.msra.mxu0 %v741_v10 }
 0x4cd   :  { %1231 = vmatprep.subr.bf16.mxu1 %v909_v13 }
 0x4cf   :  { %1212 = vmatmul.mubr.msk.bf16.vlgmr.msra.gmra.mxu1 %vm101_vm0, %v1254_v14  ;;  %1224 = vmatmul.mubr.msk.bf16.vlgmr.msra.gmra.mxu0 %vm101_vm0, %v1467_v34 }
 0x4d0   :  { %1232 = vmatpush3.bf16.msra.mxu1 %v909_v13  ;;  %1215 = vmatprep.mubr.msk.bf16.mxu1 %vm101_vm0, %v1255_v15 }
 0x4d1   :  { %1227 = vmatprep.mubr.msk.bf16.mxu0 %vm101_vm0, %v1472_v35 }
 0x4d7   :  { %1216 = vmatmul.mubr.msk.bf16.gmra.mxu1 %vm101_vm0, %v1256_v16  ;;  %1228 = vmatmul.mubr.msk.bf16.gmra.mxu0 %vm101_vm0, %v1481_v36 }
 0x4d8   :  { %1233 = vmatprep.mubr.msk.bf16.mxu1 %vm162_vm1, %v1422_v17 }
 0x4df   :  { %1234 = vmatmul.mubr.msk.bf16.vlgmr.msra.gmra.mxu1 %vm162_vm1, %v1430_v20 }
 0x4e0   :  { %1237 = vmatprep.mubr.msk.bf16.mxu1 %vm162_vm1, %v1449_v24  ;;  %v1078_v24 = vld [vmem:[%s1654_s15] ss:$0 sm:$0xff]  ;;  %s1288_s15 = smov [#allocation2]  }
 0x4e1   :  { %s1021_s1 = sshll.u32 %s1288_s15, 4  ;;  %s1022_s1 = int_to_ptr.vmem [resolvable:$true] %s1021_s1 }
 0x4e2   :  { %s1265_s20 = scalar_lea.vmem %s1022_s1, 1024  ;;  %p1270_p1 = scmp.lt.s32.totalorder %s1022_s1, %s1022_s1 }
 0x4e3   :  { %p1266_p0 = scmp.ne.s32.totalorder %s1022_s1, %s1265_s20  ;;  %p1271_p2 = scmp.lt.s32.totalorder %s1265_s20, %s1265_s20 }
 0x4e5   :  { %p1272_p3 = por %p1271_p2, %p1270_p1 }
 0x4e7   :  { %1238 = vmatmul.mubr.msk.bf16.gmra.mxu1 %vm162_vm1, %v1457_v27  ;;  %p1273_p4 = pnand %p1272_p3, %p1266_p0 }
 0x58f   :  { %v1213_v34 = vpop.f32.mrf.mxu1  ;;  %v1225_v35 = vpop.f32.mrf.mxu0 }
 0x590   :  { %v885_v20 = vadd.f32 %v1225_v35, %v1213_v34 }
 0x591   :  { %v811_v18 = vpop.f32.mrf.mxu1  ;;  %v876_v19 = vpop.f32.mrf.mxu0 }
 0x592   :  { %v877_v27 = vadd.f32 %v876_v19, %v811_v18 }
 0x593   :  { %v1214_v22 = vpop.f32.mrf.mxu1  ;;  %v1226_v23 = vpop.f32.mrf.mxu0 }
 0x594   :  { %v888_v38 = vadd.f32 %v1226_v23, %v1214_v22 }
 0x595   :  { %v814_v25 = vpop.f32.mrf.mxu1  ;;  %v879_v26 = vpop.f32.mrf.mxu0 }
 0x596   :  { %v880_v42 = vadd.f32 %v879_v26, %v814_v25 }
 0x597   :  { %v1217_v36 = vpop.f32.mrf.mxu1  ;;  %v1229_v29 = vpop.f32.mrf.mxu0 }
 0x598   :  { %v901_v48 = vadd.f32 %v1229_v29, %v1217_v36 }
 0x599   :  { %v827_v28 = vpop.f32.mrf.mxu1  ;;  %v892_v33 = vpop.f32.mrf.mxu0 }
 0x59a   :  { %v893_v53 = vadd.f32 %v892_v33, %v827_v28 }
 0x59b   :  { %v1218_v17 = vpop.f32.mrf.mxu1  ;;  %v1230_v46 = vpop.f32.mrf.mxu0 }
 0x59c   :  { %v904_v59 = vadd.f32 %v1230_v46, %v1218_v17 }
 0x59d   :  { %v830_v30 = vpop.f32.mrf.mxu1  ;;  %v895_v57 = vpop.f32.mrf.mxu0 }
 0x59e   :  { %v896_v63 = vadd.f32 %v895_v57, %v830_v30 }
 0x59f   :  { %v1235_v31 = vpop.f32.mrf.mxu1 }
 0x5a0   :  { %v977_v32 = vadd.f32 %v1235_v31, %v885_v20 }
 0x5a1   :  { %v944_v37 = vpop.f32.mrf.mxu1 }
 0x5a2   :  { %v992_v39 = vadd.f32 %v1078_v24, %v977_v32  ;;  %v975_v40 = vadd.f32 %v944_v37, %v877_v27 }
 0x5a3   :  { %v1236_v41 = vpop.f32.mrf.mxu1 }
 0x5a4   :  { %v1000_v43 = vmax.f32 %v992_v39, 0.0  ;;  %v990_v44 = vadd.f32 %v1078_v24, %v975_v40  ;;  %v978_v45 = vadd.f32 %v1236_v41, %v888_v38 }
 0x5a5   :  { %v947_v47 = vpop.f32.mrf.mxu1 }
 0x5a6   :  { %1008 = vst.msk [vmem:[#allocation2 + $0x10] sm:$0xff] %vm162_vm1, %v1000_v43  ;;  %v998_v49 = vmax.f32 %v990_v44, 0.0  ;;  %v993_v50 = vadd.f32 %v1078_v24, %v978_v45  ;;  %v976_v51 = vadd.f32 %v947_v47, %v880_v42 }
 0x5a7   :  { %v1239_v52 = vpop.f32.mrf.mxu1 }
 0x5a8   :  { %1006 = vst.msk [vmem:[#allocation2] sm:$0xff] %vm162_vm1, %v998_v49  ;;  %v1001_v54 = vmax.f32 %v993_v50, 0.0  ;;  %v991_v55 = vadd.f32 %v1078_v24, %v976_v51  ;;  %v981_v56 = vadd.f32 %v1239_v52, %v901_v48 }
 0x5a9   :  { %v960_v58 = vpop.f32.mrf.mxu1 }
 0x5aa   :  { %1009 = vst.msk [vmem:[#allocation2 + $0x18] sm:$0xff] %vm162_vm1, %v1001_v54  ;;  %v999_v11 = vmax.f32 %v991_v55, 0.0  ;;  %v996_v60 = vadd.f32 %v1078_v24, %v981_v56  ;;  %v979_v61 = vadd.f32 %v960_v58, %v893_v53 }
 0x5ab   :  { %v1240_v62 = vpop.f32.mrf.mxu1 }
 0x5ac   :  { %1007 = vst.msk [vmem:[#allocation2 + $0x8] sm:$0xff] %vm162_vm1, %v999_v11  ;;  %v1004_v0 = vmax.f32 %v996_v60, 0.0  ;;  %v994_v1 = vadd.f32 %v1078_v24, %v979_v61  ;;  %v982_v2 = vadd.f32 %v1240_v62, %v904_v59 }
 0x5ad   :  { %v963_v3 = vpop.f32.mrf.mxu1 }
 0x5ae   :  { %1012 = vst.msk [vmem:[#allocation2 + $0x30] sm:$0xff] %vm162_vm1, %v1004_v0  ;;  %v1002_v4 = vmax.f32 %v994_v1, 0.0  ;;  %v997_v5 = vadd.f32 %v1078_v24, %v982_v2  ;;  %v980_v6 = vadd.f32 %v963_v3, %v896_v63 }
 0x5b0   :  { %1010 = vst.msk [vmem:[#allocation2 + $0x20] sm:$0xff] %vm162_vm1, %v1002_v4  ;;  %v1005_v7 = vmax.f32 %v997_v5, 0.0  ;;  %v995_v8 = vadd.f32 %v1078_v24, %v980_v6 }
 0x5b2   :  { %1013 = vst.msk [vmem:[#allocation2 + $0x38] sm:$0xff] %vm162_vm1, %v1005_v7  ;;  %v1003_v21 = vmax.f32 %v995_v8, 0.0 }
 0x5b4   :  { %1011 = vst.msk [vmem:[#allocation2 + $0x28] sm:$0xff] %vm162_vm1, %v1003_v21 }
 0x5b5   :  { %1276 = shalt.err (!%p1273_p4)
}
 0x5b6   :  { %s1289_s21 = smov 128   ;;  %s1290_s22 = smov 8  }
 0x5b7   :  { %1027 = dma.vmem_to_hbm [thread:$0]  %s1022_s1, 1024, %s1656_s17, [#allocation3], %s1289_s21, %s1289_s21, %s1290_s22  }
 0x5b8   :  { %1285 = dma.done.wait [#allocation3], 1024  }
 0x5b9   :  { %1286 = vsyncadd [#allocation3], 4294966272 }
 0x5ba   :  { %1033 = vsyncpa [#allocation3], 1 }

</bundles_post_ra>
